<compile_context>
chip_gen: v7x
topology: tpu7x:2x2x1
jax: 0.10.0
libtpu: 0.0.40
codegen_flags: <defaults>
</compile_context>

<pallas_src>
import math
import jax
import jax.numpy as jnp
from jax.experimental import pallas as pl
from jax.experimental.pallas import tpu as pltpu


def _round_up(x, m):
    return (x + m - 1) // m * m


def _mxu_pad(v):
    # 128 minimum (lane width); 256-align larger dims for the 256x256 MXUs (v6e/v7x).
    return 128 if v <= 128 else _round_up(v, 256)


def _make_condconv_kernel(num_experts):
    def kernel(r_sref, p_ref, w_ref, b_ref, o_ref, wmix_ref):
        # r_sref  : (B*E,) f32 in SMEM (scalar prefetch)     -- routing weights
        # p_ref   : (TM, K_pad)    im2col patch tile (operand dtype)
        # w_ref   : (E, K_pad, TN) expert filters for this Cout tile
        # b_ref   : (1, TN)        pre-mixed bias for this sample (f32)
        # o_ref   : (TM, TN)       output tile
        # wmix_ref: (K_pad, TN)    VMEM scratch: mixed filter (operand dtype)
        b = pl.program_id(0)

        # Mix expert filters for this (sample, Cout-tile) once per inner M loop:
        #   W_mix = sum_e r[b, e] * W_e      (VPU FMAs; trivial next to the matmul)
        # m is the innermost grid axis and is marked "arbitrary", so m == 0 is always the
        # first step a core sees for a given (b, n) and the scratch is valid afterwards.
        @pl.when(pl.program_id(2) == 0)
        def _():
            acc = r_sref[b * num_experts] * w_ref[0].astype(jnp.float32)
            for e in range(1, num_experts):                  # static unroll, E is small
                acc = acc + r_sref[b * num_experts + e] * w_ref[e].astype(jnp.float32)
            wmix_ref[...] = acc.astype(wmix_ref.dtype)

        # Single MXU matmul per tile, f32 accumulation, pre-mixed f32 bias, lane-dense store.
        out = jnp.dot(p_ref[...], wmix_ref[...], preferred_element_type=jnp.float32)
        o_ref[...] = (out + b_ref[...]).astype(o_ref.dtype)

    return kernel


def cond_conv2d(x, routing_weights, expert_weight, expert_bias=None, *,
                out_channels, kernel_size=(3, 3), stride=(1, 1),
                padding=(1, 1), dilation=(1, 1), groups=1, compute_dtype=None):
    """CondConv2d forward.  x: NCHW, routing_weights: (B, num_experts),
    expert_weight: (num_experts, O * Cin/groups * KH * KW) in torch (O,Cin,KH,KW) order,
    expert_bias: (num_experts, O) or None.  Returns NCHW output.
    compute_dtype: optional MXU operand dtype (e.g. jnp.bfloat16) for f32 models;
    accumulation stays f32 (precision tradeoff is the caller's choice)."""
    B, C, H, W = x.shape
    E = routing_weights.shape[1]
    KH, KW = kernel_size
    sh, sw = stride
    ph, pw = padding
    dh, dw = dilation
    O = out_channels
    assert groups == 1  # TODO(synk): grouped/depthwise CondConv (groups > 1) not implemented.
    # TODO(synk): dynamic 'same' padding path (conv2d_same) not implemented; static padding only.

    Ho = (H + 2 * ph - dh * (KH - 1) - 1) // sh + 1
    Wo = (W + 2 * pw - dw * (KW - 1) - 1) // sw + 1
    M = Ho * Wo
    K = KH * KW * C

    op_dtype = jnp.dtype(compute_dtype) if compute_dtype is not None else jnp.dtype(x.dtype)

    # ---- glue: NCHW -> NHWC, pad, im2col (tap-major, then Cin) ----
    # TODO(synk): build patches on-chip (slab of padded input rows + per-tap matmuls) to
    # avoid the ~KH*KW x HBM inflation of a materialized im2col (dominant cost on v5e).
    x_nhwc = jnp.transpose(x, (0, 2, 3, 1)).astype(op_dtype)
    xp = jnp.pad(x_nhwc, ((0, 0), (ph, ph), (pw, pw), (0, 0)))
    cols = []
    for kh in range(KH):
        for kw in range(KW):
            cols.append(xp[:, kh * dh: kh * dh + (Ho - 1) * sh + 1: sh,
                              kw * dw: kw * dw + (Wo - 1) * sw + 1: sw, :])
    patches = jnp.stack(cols, axis=3).reshape(B, M, K)            # (B, M, KH*KW*C)

    # ---- MXU-aligned padding & generation-aware VMEM budget ----
    K_pad = _mxu_pad(K)
    O_pad = _mxu_pad(O)
    in_bytes = op_dtype.itemsize
    out_bytes = jnp.dtype(x.dtype).itemsize

    try:
        vmem_cap = int(getattr(pltpu.get_tpu_info(), "vmem_capacity_bytes", 128 << 20))
    except Exception:
        vmem_cap = 128 << 20
    # ~48 MiB usable on v7x (64 MiB physical), ~96 MiB on v5e/v6e (128 MiB).
    budget = min(int(vmem_cap * 3 // 4), vmem_cap - (16 << 20))

    # Cout tile: bounds expert-filter VMEM residency independently of layer width.
    TN = O_pad if O_pad <= 256 else 256
    if TN > 128 and (1 if TN == O_pad else 2) * E * K_pad * TN * in_bytes > budget // 2:
        TN = 128
    n_tiles = O_pad // TN
    w_buffers = 1 if n_tiles == 1 else 2      # constant index map -> single-buffered
    # TODO(synk): add a K ("arbitrary") reduction axis (accumulator + pl.when finalize)
    # for layers where even the (E, K_pad, 128) filter block exceeds the VMEM budget.

    # M tile: largest that fits the remaining budget (per-step overhead amortization).
    M8 = _round_up(M, 8)
    cand = ([M8] if M8 <= 1024 else []) + [c for c in (1024, 512, 256, 128, 64, 8) if c < M8]
    if not cand:
        cand = [M8]
    fixed = (w_buffers * E * K_pad * TN * in_bytes      # expert filters
             + K_pad * TN * in_bytes                    # mixed-filter scratch
             + 2 * TN * 4)                              # bias
    TM = cand[-1]
    for tm in cand:
        if fixed + 2 * tm * K_pad * in_bytes + 2 * tm * TN * out_bytes + tm * TN * 4 <= budget:
            TM = tm
            break
    M_pad = _round_up(M, TM)
    vmem_est = fixed + 2 * TM * K_pad * in_bytes + 2 * TM * TN * out_bytes + TM * TN * 4
    vmem_limit = int(min(max(int(vmem_est * 1.5), 32 << 20), budget))

    patches = jnp.pad(patches, ((0, 0), (0, M_pad - M), (0, K_pad - K)))

    # expert filters (E, O*C*KH*KW) [torch (O,C,KH,KW)] -> (E, K, O) with K = (kh, kw, c)
    w = expert_weight.reshape(E, O, C, KH, KW)
    w = jnp.transpose(w, (0, 3, 4, 2, 1)).reshape(E, K, O).astype(op_dtype)
    w = jnp.pad(w, ((0, 0), (0, K_pad - K), (0, O_pad - O)))

    # pre-mixed bias: one tiny XLA matmul instead of an in-kernel VPU reduce.
    if expert_bias is None:
        bias_mixed = jnp.zeros((B, O), jnp.float32)
    else:
        bias_mixed = jnp.dot(routing_weights.astype(jnp.float32),
                             expert_bias.astype(jnp.float32))
    bias_mixed = jnp.pad(bias_mixed, ((0, 0), (0, O_pad - O))).reshape(B, 1, O_pad)

    # routing weights: flat 1D f32 for SMEM scalar prefetch (2D would pad to (8,128) words).
    routing_flat = routing_weights.astype(jnp.float32).reshape(B * E)

    # Grid: M innermost so W_mix is computed once per (b, n) and the big expert block is
    # DMA'd once per (b, n) rather than once per M tile.
    grid = (B, n_tiles, M_pad // TM)
    kernel = _make_condconv_kernel(E)

    flops = int(2 * B * M_pad * K_pad * O_pad           # patches @ W_mix
                + 2 * B * n_tiles * E * K_pad * TN      # per-(b, n) weight mixing
                + B * M_pad * O_pad)                    # bias add
    bytes_accessed = int(patches.size * in_bytes * n_tiles
                         + w.size * in_bytes * (1 if n_tiles == 1 else B)
                         + bias_mixed.size * 4
                         + B * M_pad * O_pad * out_bytes)

    def build(single_buffer_weights):
        if single_buffer_weights:
            w_spec = pl.BlockSpec((E, K_pad, TN), lambda b, n, m, r: (0, 0, n),
                                  pipeline_mode=pl.Buffered(1))
        else:
            w_spec = pl.BlockSpec((E, K_pad, TN), lambda b, n, m, r: (0, 0, n))
        return pl.pallas_call(
            kernel,
            out_shape=jax.ShapeDtypeStruct((B, M_pad, O_pad), x.dtype),
            grid_spec=pltpu.PrefetchScalarGridSpec(
                num_scalar_prefetch=1,                           # routing weights -> SMEM
                grid=grid,
                in_specs=[
                    pl.BlockSpec((pl.Squeezed(), TM, K_pad),     # im2col patch tile
                                 lambda b, n, m, r: (b, m, 0)),
                    w_spec,                                      # expert filters (Cout tile)
                    pl.BlockSpec((pl.Squeezed(), 1, TN),         # pre-mixed bias
                                 lambda b, n, m, r: (b, 0, n)),
                ],
                out_specs=pl.BlockSpec((pl.Squeezed(), TM, TN),
                                       lambda b, n, m, r: (b, m, n)),
                scratch_shapes=[pltpu.VMEM((K_pad, TN), op_dtype)],   # mixed filter
            ),
            compiler_params=pltpu.CompilerParams(
                # batch / Cout-tile axes shard across v7x's two TensorCores; the M axis
                # is "arbitrary" so every core sees the m==0 weight-mix step.
                dimension_semantics=("parallel", "parallel", "arbitrary"),
                vmem_limit_bytes=vmem_limit),
            cost_estimate=pl.CostEstimate(flops=flops, transcendentals=0,
                                          bytes_accessed=bytes_accessed),
        )

    try:
        out = build(n_tiles == 1)(routing_flat, patches, w, bias_mixed)
    except Exception:
        if n_tiles != 1:
            raise
        # Fallback if single-buffered pipeline_mode is rejected by this jax build.
        out = build(False)(routing_flat, patches, w, bias_mixed)

    out = out[:, :M, :O].reshape(B, Ho, Wo, O)
    return jnp.transpose(out, (0, 3, 1, 2))              # back to NCHW


if __name__ == "__main__":
    key = jax.random.PRNGKey(0)
    B, Cin, H, W = 2, 4, 16, 16
    Cout, E = 8, 4
    KH = KW = 3
    stride = (1, 1)
    dilation = (1, 1)
    # timm get_padding_value('') -> static padding ((s-1)+d*(k-1))//2
    pad = (((stride[0] - 1) + dilation[0] * (KH - 1)) // 2,
           ((stride[1] - 1) + dilation[1] * (KW - 1)) // 2)

    kx, kr, kwt, kb = jax.random.split(key, 4)
    x = jax.random.normal(kx, (B, Cin, H, W), jnp.float32)
    routing = jax.nn.softmax(jax.random.normal(kr, (B, E), jnp.float32), axis=-1)

    # deterministic parameter init (matches shapes/bounds of reset_parameters,
    # not torch's RNG): kaiming_uniform(a=sqrt(5)) bound == 1/sqrt(fan_in)
    fan_in = Cin * KH * KW
    wbound = 1.0 / math.sqrt(fan_in)
    expert_weight = jax.random.uniform(
        kwt, (E, Cout * Cin * KH * KW), jnp.float32, -wbound, wbound)
    bbound = 1.0 / math.sqrt(fan_in)
    expert_bias = jax.random.uniform(kb, (E, Cout), jnp.float32, -bbound, bbound)

    out = cond_conv2d(x, routing, expert_weight, expert_bias,
                      out_channels=Cout, kernel_size=(KH, KW),
                      stride=stride, padding=pad, dilation=dilation, groups=1)
    out = jax.block_until_ready(out)

    # pure-JAX reference (same math as the torch grouped-conv trick, per sample)
    wb = (routing @ expert_weight).reshape(B, Cout, Cin, KH, KW)
    bb = routing @ expert_bias
    refs = []
    for bi in range(B):
        o = jax.lax.conv_general_dilated(
            x[bi:bi + 1], wb[bi], window_strides=stride,
            padding=[(pad[0], pad[0]), (pad[1], pad[1])],
            rhs_dilation=dilation,
            dimension_numbers=("NCHW", "OIHW", "NCHW"))
        refs.append(o + bb[bi][None, :, None, None])
    ref = jnp.concatenate(refs, axis=0)

    assert out.shape == (B, Cout, H, W), out.shape
    assert jnp.allclose(out, ref, atol=1e-4, rtol=1e-4), \
        float(jnp.max(jnp.abs(out - ref)))
    print("KERNEL_OK")
</pallas_src>

<mosaic_0001>
module attributes {stable_mosaic.version = 11 : i64} {
  func.func @kernel(%arg0: i32, %arg1: i32, %arg2: i32, %arg3: memref<8xf32, #tpu.memory_space<smem>>, %arg4: memref<1x256x128xf32, #tpu.memory_space<vmem>>, %arg5: memref<4x128x128xf32, #tpu.memory_space<vmem>>, %arg6: memref<1x1x128xf32, #tpu.memory_space<vmem>>, %arg7: memref<1x256x128xf32, #tpu.memory_space<vmem>>, %arg8: memref<128x128xf32, #tpu.memory_space<vmem>>) attributes {dimension_semantics = [#tpu.dimension_semantics<parallel>, #tpu.dimension_semantics<parallel>, #tpu.dimension_semantics<arbitrary>], iteration_bounds = array<i64: 2, 1, 1>, scalar_prefetch = 1 : i64, scratch_operands = 1 : i64, tpu.core_type = #tpu.core_type<tc>, window_params = [{transform_indices = @transform_0, window_bounds = array<i64: 1, 256, 128>}, {pipeline_mode = #tpu.pipeline_mode<synchronous>, transform_indices = @transform_1, window_bounds = array<i64: 4, 128, 128>}, {transform_indices = @transform_2, window_bounds = array<i64: 1, 1, 128>}, {transform_indices = @transform_3, window_bounds = array<i64: 1, 256, 128>}]} {
    %c0_i32 = arith.constant 0 : i32
    %0 = arith.cmpi eq, %arg2, %c0_i32 : i32
    %1 = arith.extui %0 : i1 to i32
    %c0_i32_0 = arith.constant 0 : i32
    %2 = arith.cmpi ne, %1, %c0_i32_0 : i32
    scf.if %2 {
      %c4_i32 = arith.constant 4 : i32
      %14 = arith.muli %arg0, %c4_i32 : i32
      %15 = arith.index_cast %14 : i32 to index
      %16 = memref.load %arg3[%15] : memref<8xf32, #tpu.memory_space<smem>>
      %c0_11 = arith.constant 0 : index
      %c0_12 = arith.constant 0 : index
      %c0_13 = arith.constant 0 : index
      %17 = vector.load %arg5[%c0_11, %c0_12, %c0_13] : memref<4x128x128xf32, #tpu.memory_space<vmem>>, vector<1x128x128xf32>
      %18 = vector.shape_cast %17 : vector<1x128x128xf32> to vector<128x128xf32>
      %19 = vector.broadcast %16 : f32 to vector<128x128xf32>
      %20 = arith.mulf %19, %18 : vector<128x128xf32>
      %c4_i32_14 = arith.constant 4 : i32
      %21 = arith.muli %arg0, %c4_i32_14 : i32
      %c1_i32 = arith.constant 1 : i32
      %22 = arith.addi %21, %c1_i32 : i32
      %23 = arith.index_cast %22 : i32 to index
      %24 = memref.load %arg3[%23] : memref<8xf32, #tpu.memory_space<smem>>
      %c1 = arith.constant 1 : index
      %c0_15 = arith.constant 0 : index
      %c0_16 = arith.constant 0 : index
      %25 = vector.load %arg5[%c1, %c0_15, %c0_16] : memref<4x128x128xf32, #tpu.memory_space<vmem>>, vector<1x128x128xf32>
      %26 = vector.shape_cast %25 : vector<1x128x128xf32> to vector<128x128xf32>
      %27 = vector.broadcast %24 : f32 to vector<128x128xf32>
      %28 = arith.mulf %27, %26 : vector<128x128xf32>
      %29 = arith.addf %20, %28 : vector<128x128xf32>
      %c4_i32_17 = arith.constant 4 : i32
      %30 = arith.muli %arg0, %c4_i32_17 : i32
      %c2_i32 = arith.constant 2 : i32
      %31 = arith.addi %30, %c2_i32 : i32
      %32 = arith.index_cast %31 : i32 to index
      %33 = memref.load %arg3[%32] : memref<8xf32, #tpu.memory_space<smem>>
      %c2 = arith.constant 2 : index
      %c0_18 = arith.constant 0 : index
      %c0_19 = arith.constant 0 : index
      %34 = vector.load %arg5[%c2, %c0_18, %c0_19] : memref<4x128x128xf32, #tpu.memory_space<vmem>>, vector<1x128x128xf32>
      %35 = vector.shape_cast %34 : vector<1x128x128xf32> to vector<128x128xf32>
      %36 = vector.broadcast %33 : f32 to vector<128x128xf32>
      %37 = arith.mulf %36, %35 : vector<128x128xf32>
      %38 = arith.addf %29, %37 : vector<128x128xf32>
      %c4_i32_20 = arith.constant 4 : i32
      %39 = arith.muli %arg0, %c4_i32_20 : i32
      %c3_i32 = arith.constant 3 : i32
      %40 = arith.addi %39, %c3_i32 : i32
      %41 = arith.index_cast %40 : i32 to index
      %42 = memref.load %arg3[%41] : memref<8xf32, #tpu.memory_space<smem>>
      %c3 = arith.constant 3 : index
      %c0_21 = arith.constant 0 : index
      %c0_22 = arith.constant 0 : index
      %43 = vector.load %arg5[%c3, %c0_21, %c0_22] : memref<4x128x128xf32, #tpu.memory_space<vmem>>, vector<1x128x128xf32>
      %44 = vector.shape_cast %43 : vector<1x128x128xf32> to vector<128x128xf32>
      %45 = vector.broadcast %42 : f32 to vector<128x128xf32>
      %46 = arith.mulf %45, %44 : vector<128x128xf32>
      %47 = arith.addf %38, %46 : vector<128x128xf32>
      %c0_23 = arith.constant 0 : index
      %c0_24 = arith.constant 0 : index
      %48 = vector.load %arg8[%c0_23, %c0_24] : memref<128x128xf32, #tpu.memory_space<vmem>>, vector<128x128xf32>
      tpu.vector_store %arg8[%c0_23, %c0_24], %47 {strides = array<i32>} : memref<128x128xf32, #tpu.memory_space<vmem>>, vector<128x128xf32>,
    } else {
    }
    %c0 = arith.constant 0 : index
    %c0_1 = arith.constant 0 : index
    %c0_2 = arith.constant 0 : index
    %3 = vector.load %arg4[%c0, %c0_1, %c0_2] : memref<1x256x128xf32, #tpu.memory_space<vmem>>, vector<1x256x128xf32>
    %4 = vector.shape_cast %3 : vector<1x256x128xf32> to vector<256x128xf32>
    %c0_3 = arith.constant 0 : index
    %c0_4 = arith.constant 0 : index
    %5 = vector.load %arg8[%c0_3, %c0_4] : memref<128x128xf32, #tpu.memory_space<vmem>>, vector<128x128xf32>
    %cst = arith.constant dense<0.000000e+00> : vector<256x128xf32>
    %6 = tpu.matmul %4, %5, %cst {dimension_numbers = #tpu.dot_dimension_numbers<[1], [0], [0], [1], [0, 0, 1, 1], [], []>} : vector<256x128xf32>, vector<128x128xf32>, vector<256x128xf32> -> vector<256x128xf32>
    %c0_5 = arith.constant 0 : index
    %c0_6 = arith.constant 0 : index
    %c0_7 = arith.constant 0 : index
    %7 = vector.load %arg6[%c0_5, %c0_6, %c0_7] : memref<1x1x128xf32, #tpu.memory_space<vmem>>, vector<1x1x128xf32>
    %8 = vector.shape_cast %7 : vector<1x1x128xf32> to vector<1x128xf32>
    %9 = vector.broadcast %8 : vector<1x128xf32> to vector<256x128xf32>
    %10 = arith.addf %6, %9 : vector<256x128xf32>
    %c0_8 = arith.constant 0 : index
    %c0_9 = arith.constant 0 : index
    %c0_10 = arith.constant 0 : index
    %11 = vector.load %arg7[%c0_8, %c0_9, %c0_10] : memref<1x256x128xf32, #tpu.memory_space<vmem>>, vector<1x256x128xf32>
    %12 = vector.shape_cast %11 : vector<1x256x128xf32> to vector<256x128xf32>
    %13 = vector.shape_cast %10 : vector<256x128xf32> to vector<1x256x128xf32>
    tpu.vector_store %arg7[%c0_8, %c0_9, %c0_10], %13 {strides = array<i32>} : memref<1x256x128xf32, #tpu.memory_space<vmem>>, vector<1x256x128xf32>,
    return
  }
  func.func @transform_0(%arg0: i32, %arg1: i32, %arg2: i32, %arg3: memref<8xf32, #tpu.memory_space<smem>>) -> (i32, i32, i32) {
    %c0_i32 = arith.constant 0 : i32
    %c0_i32_0 = arith.constant 0 : i32
    return %arg0, %arg2, %c0_i32 : i32, i32, i32
  }
  func.func @transform_1(%arg0: i32, %arg1: i32, %arg2: i32, %arg3: memref<8xf32, #tpu.memory_space<smem>>) -> (i32, i32, i32) {
    %c0_i32 = arith.constant 0 : i32
    %c0_i32_0 = arith.constant 0 : i32
    %c0_i32_1 = arith.constant 0 : i32
    return %c0_i32, %c0_i32_0, %arg1 : i32, i32, i32
  }
  func.func @transform_2(%arg0: i32, %arg1: i32, %arg2: i32, %arg3: memref<8xf32, #tpu.memory_space<smem>>) -> (i32, i32, i32) {
    %c0_i32 = arith.constant 0 : i32
    %c0_i32_0 = arith.constant 0 : i32
    return %arg0, %c0_i32, %arg1 : i32, i32, i32
  }
  func.func @transform_3(%arg0: i32, %arg1: i32, %arg2: i32, %arg3: memref<8xf32, #tpu.memory_space<smem>>) -> (i32, i32, i32) {
    %c0_i32 = arith.constant 0 : i32
    return %arg0, %arg2, %arg1 : i32, i32, i32
  }
}

module attributes {stable_mosaic.version = 11 : i64} {
  func.func @kernel(%arg0: i32, %arg1: i32, %arg2: i32, %arg3: memref<8xf32, #tpu.memory_space<smem>>, %arg4: memref<1x256x128xf32, #tpu.memory_space<vmem>>, %arg5: memref<4x128x128xf32, #tpu.memory_space<vmem>>, %arg6: memref<1x1x128xf32, #tpu.memory_space<vmem>>, %arg7: memref<1x256x128xf32, #tpu.memory_space<vmem>>, %arg8: memref<128x128xf32, #tpu.memory_space<vmem>>) attributes {dimension_semantics = [#tpu.dimension_semantics<parallel>, #tpu.dimension_semantics<parallel>, #tpu.dimension_semantics<arbitrary>], iteration_bounds = array<i64: 2, 1, 1>, scalar_prefetch = 1 : i64, scratch_operands = 1 : i64, tpu.core_type = #tpu.core_type<tc>, window_params = [{transform_indices = @transform_0, window_bounds = array<i64: 1, 256, 128>}, {transform_indices = @transform_1, window_bounds = array<i64: 4, 128, 128>}, {transform_indices = @transform_2, window_bounds = array<i64: 1, 1, 128>}, {transform_indices = @transform_3, window_bounds = array<i64: 1, 256, 128>}]} {
    %c0_i32 = arith.constant 0 : i32
    %0 = arith.cmpi eq, %arg2, %c0_i32 : i32
    %1 = arith.extui %0 : i1 to i32
    %c0_i32_0 = arith.constant 0 : i32
    %2 = arith.cmpi ne, %1, %c0_i32_0 : i32
    scf.if %2 {
      %c4_i32 = arith.constant 4 : i32
      %14 = arith.muli %arg0, %c4_i32 : i32
      %15 = arith.index_cast %14 : i32 to index
      %16 = memref.load %arg3[%15] : memref<8xf32, #tpu.memory_space<smem>>
      %c0_11 = arith.constant 0 : index
      %c0_12 = arith.constant 0 : index
      %c0_13 = arith.constant 0 : index
      %17 = vector.load %arg5[%c0_11, %c0_12, %c0_13] : memref<4x128x128xf32, #tpu.memory_space<vmem>>, vector<1x128x128xf32>
      %18 = vector.shape_cast %17 : vector<1x128x128xf32> to vector<128x128xf32>
      %19 = vector.broadcast %16 : f32 to vector<128x128xf32>
      %20 = arith.mulf %19, %18 : vector<128x128xf32>
      %c4_i32_14 = arith.constant 4 : i32
      %21 = arith.muli %arg0, %c4_i32_14 : i32
      %c1_i32 = arith.constant 1 : i32
      %22 = arith.addi %21, %c1_i32 : i32
      %23 = arith.index_cast %22 : i32 to index
      %24 = memref.load %arg3[%23] : memref<8xf32, #tpu.memory_space<smem>>
      %c1 = arith.constant 1 : index
      %c0_15 = arith.constant 0 : index
      %c0_16 = arith.constant 0 : index
      %25 = vector.load %arg5[%c1, %c0_15, %c0_16] : memref<4x128x128xf32, #tpu.memory_space<vmem>>, vector<1x128x128xf32>
      %26 = vector.shape_cast %25 : vector<1x128x128xf32> to vector<128x128xf32>
      %27 = vector.broadcast %24 : f32 to vector<128x128xf32>
      %28 = arith.mulf %27, %26 : vector<128x128xf32>
      %29 = arith.addf %20, %28 : vector<128x128xf32>
      %c4_i32_17 = arith.constant 4 : i32
      %30 = arith.muli %arg0, %c4_i32_17 : i32
      %c2_i32 = arith.constant 2 : i32
      %31 = arith.addi %30, %c2_i32 : i32
      %32 = arith.index_cast %31 : i32 to index
      %33 = memref.load %arg3[%32] : memref<8xf32, #tpu.memory_space<smem>>
      %c2 = arith.constant 2 : index
      %c0_18 = arith.constant 0 : index
      %c0_19 = arith.constant 0 : index
      %34 = vector.load %arg5[%c2, %c0_18, %c0_19] : memref<4x128x128xf32, #tpu.memory_space<vmem>>, vector<1x128x128xf32>
      %35 = vector.shape_cast %34 : vector<1x128x128xf32> to vector<128x128xf32>
      %36 = vector.broadcast %33 : f32 to vector<128x128xf32>
      %37 = arith.mulf %36, %35 : vector<128x128xf32>
      %38 = arith.addf %29, %37 : vector<128x128xf32>
      %c4_i32_20 = arith.constant 4 : i32
      %39 = arith.muli %arg0, %c4_i32_20 : i32
      %c3_i32 = arith.constant 3 : i32
      %40 = arith.addi %39, %c3_i32 : i32
      %41 = arith.index_cast %40 : i32 to index
      %42 = memref.load %arg3[%41] : memref<8xf32, #tpu.memory_space<smem>>
      %c3 = arith.constant 3 : index
      %c0_21 = arith.constant 0 : index
      %c0_22 = arith.constant 0 : index
      %43 = vector.load %arg5[%c3, %c0_21, %c0_22] : memref<4x128x128xf32, #tpu.memory_space<vmem>>, vector<1x128x128xf32>
      %44 = vector.shape_cast %43 : vector<1x128x128xf32> to vector<128x128xf32>
      %45 = vector.broadcast %42 : f32 to vector<128x128xf32>
      %46 = arith.mulf %45, %44 : vector<128x128xf32>
      %47 = arith.addf %38, %46 : vector<128x128xf32>
      %c0_23 = arith.constant 0 : index
      %c0_24 = arith.constant 0 : index
      %48 = vector.load %arg8[%c0_23, %c0_24] : memref<128x128xf32, #tpu.memory_space<vmem>>, vector<128x128xf32>
      tpu.vector_store %arg8[%c0_23, %c0_24], %47 {strides = array<i32>} : memref<128x128xf32, #tpu.memory_space<vmem>>, vector<128x128xf32>,
    } else {
    }
    %c0 = arith.constant 0 : index
    %c0_1 = arith.constant 0 : index
    %c0_2 = arith.constant 0 : index
    %3 = vector.load %arg4[%c0, %c0_1, %c0_2] : memref<1x256x128xf32, #tpu.memory_space<vmem>>, vector<1x256x128xf32>
    %4 = vector.shape_cast %3 : vector<1x256x128xf32> to vector<256x128xf32>
    %c0_3 = arith.constant 0 : index
    %c0_4 = arith.constant 0 : index
    %5 = vector.load %arg8[%c0_3, %c0_4] : memref<128x128xf32, #tpu.memory_space<vmem>>, vector<128x128xf32>
    %cst = arith.constant dense<0.000000e+00> : vector<256x128xf32>
    %6 = tpu.matmul %4, %5, %cst {dimension_numbers = #tpu.dot_dimension_numbers<[1], [0], [0], [1], [0, 0, 1, 1], [], []>} : vector<256x128xf32>, vector<128x128xf32>, vector<256x128xf32> -> vector<256x128xf32>
    %c0_5 = arith.constant 0 : index
    %c0_6 = arith.constant 0 : index
    %c0_7 = arith.constant 0 : index
    %7 = vector.load %arg6[%c0_5, %c0_6, %c0_7] : memref<1x1x128xf32, #tpu.memory_space<vmem>>, vector<1x1x128xf32>
    %8 = vector.shape_cast %7 : vector<1x1x128xf32> to vector<1x128xf32>
    %9 = vector.broadcast %8 : vector<1x128xf32> to vector<256x128xf32>
    %10 = arith.addf %6, %9 : vector<256x128xf32>
    %c0_8 = arith.constant 0 : index
    %c0_9 = arith.constant 0 : index
    %c0_10 = arith.constant 0 : index
    %11 = vector.load %arg7[%c0_8, %c0_9, %c0_10] : memref<1x256x128xf32, #tpu.memory_space<vmem>>, vector<1x256x128xf32>
    %12 = vector.shape_cast %11 : vector<1x256x128xf32> to vector<256x128xf32>
    %13 = vector.shape_cast %10 : vector<256x128xf32> to vector<1x256x128xf32>
    tpu.vector_store %arg7[%c0_8, %c0_9, %c0_10], %13 {strides = array<i32>} : memref<1x256x128xf32, #tpu.memory_space<vmem>>, vector<1x256x128xf32>,
    return
  }
  func.func @transform_0(%arg0: i32, %arg1: i32, %arg2: i32, %arg3: memref<8xf32, #tpu.memory_space<smem>>) -> (i32, i32, i32) {
    %c0_i32 = arith.constant 0 : i32
    %c0_i32_0 = arith.constant 0 : i32
    return %arg0, %arg2, %c0_i32 : i32, i32, i32
  }
  func.func @transform_1(%arg0: i32, %arg1: i32, %arg2: i32, %arg3: memref<8xf32, #tpu.memory_space<smem>>) -> (i32, i32, i32) {
    %c0_i32 = arith.constant 0 : i32
    %c0_i32_0 = arith.constant 0 : i32
    %c0_i32_1 = arith.constant 0 : i32
    return %c0_i32, %c0_i32_0, %arg1 : i32, i32, i32
  }
  func.func @transform_2(%arg0: i32, %arg1: i32, %arg2: i32, %arg3: memref<8xf32, #tpu.memory_space<smem>>) -> (i32, i32, i32) {
    %c0_i32 = arith.constant 0 : i32
    %c0_i32_0 = arith.constant 0 : i32
    return %arg0, %c0_i32, %arg1 : i32, i32, i32
  }
  func.func @transform_3(%arg0: i32, %arg1: i32, %arg2: i32, %arg3: memref<8xf32, #tpu.memory_space<smem>>) -> (i32, i32, i32) {
    %c0_i32 = arith.constant 0 : i32
    return %arg0, %arg2, %arg1 : i32, i32, i32
  }
}

</mosaic_0001>

<bundles_post_ra>
// kernel: tpu_custom_call.1
= control target key start
LH: loop header
LB: loop body
LE: loop exit
PB: predicated region body
PF: predicated region fallthrough
CT: control target
= control target key end

     0   :  { %s1813_s0 = inlined_call_operand.hbm [shape: f32[8], index: 0, kind: input, shape index: {}]   ;;  %s1814_s1 = inlined_call_operand.hbm [shape: f32[2,256,128], index: 1, kind: input, shape index: {}]   ;;  %s1815_s2 = inlined_call_operand.hbm [shape: f32[4,128,128], index: 2, kind: input, shape index: {}]   ;;  %s1816_s3 = inlined_call_operand.vmem [shape: f32[2,1,128], index: 3, kind: input, shape index: {}]   ;;  %s1817_s4 = inlined_call_operand.hbm [shape: f32[2,256,128], index: 4, kind: output, shape index: {}]  }
   0x1   :  { %s1200_s17 = scalar_lea.hbm %s1813_s0, 16 }
   0x2   :  { %p1201_p0 = scmp.ne.s32.totalorder %s1813_s0, %s1200_s17  ;;  %p1204_p1 = scmp.lt.u32.totalorder %s1200_s17, %s1813_s0 }
   0x4   :  { %p1206_p2 = pnand %p1204_p1, %p1201_p0 }
   0x6   :  { %1209 = shalt.err (!%p1206_p2)  }
   0x7   :  { %s1358_s22 = smov [#allocation4]  }
   0x8   :  { %10 = dma.hbm_to_smem %s1813_s0, 16, %s1358_s22, [#allocation3] }
   0x9   :  { %1320 = dma.done.wait [#allocation3], 16 }
   0xa   :  { %1321 = vsyncadd [#allocation3], 4294967280 }
   0xb   :  { %12 = sfence }
   0xc   :  { %13 = vsyncpa [#allocation6], 0 }
   0xd   :  { %15 = vsyncpa [#allocation6 + $0x1], 0 }
   0xe   :  { %16 = vsyncpa [#allocation9], 0 }
   0xf   :  { %17 = vsyncpa [#allocation7], 0 }
  0x10   :  { %19 = vsyncpa [#allocation7 + $0x1], 0  ;;  %s1403_s25 = smov 0   ;;  %s1405_s26 = smov 0  }
  0x11   :  { %s1407_s27 = smov 0   ;;  %s1409_s28 = smov 0  }
  0x12   :  { %s1411_s29 = smov 0   ;;  %s1413_s30 = smov 0  }
  0x13 LB: > { %s925_s0 = sadd.s32 4294967295, %s1356_s30   ;;  %s926_s5 = sadd.s32 4294967294, %s1356_s30   ;;  %s1356_s30 = sphi %s1413_s30, %s25_s30   ;;  %s1352_s29 = sphi %s1411_s29, %s1841_s29   ;;  %s1348_s28 = sphi %s1409_s28, %s1840_s28   ;;  %s1344_s27 = sphi %s1407_s27, %s1839_s27   ;;  %s1340_s26 = sphi %s1405_s26, %s1838_s26   ;;  %s1336_s25 = sphi %s1403_s25, %s1837_s25  }
  0x14   : > { %p66_p3 = scmp.ne.s32.totalorder %s1340_s26, %s1336_s25  ;;  %p1437_p4 = scmp.eq.s32.totalorder %s925_s0, 0 }
  0x15   : > { %p1441_p5 = scmp.eq.s32.totalorder %s925_s0, 1  ;;  %p154_p6 = scmp.eq.s32.totalorder %s926_s5, 1 }
  0x16   : > { %s1822_s6 = scalar_select %p1437_p4, 1, 0 }
  0x17   : > { %s1823_s7 = scalar_select %p1441_p5, 1, 0 }
  0x18   : > { %p1447_p7 = por %p1437_p4, %p66_p3  ;;  %p927_p8 = scmp.ge.s32.totalorder %s1356_s30, 1 }
  0x19   : > { %p1452_p9 = por %p154_p6, %p66_p3  ;;  %p161_p10 = scmp.lt.s32.totalorder %s1356_s30, 3 }
  0x1a   : > { %s1824_s8 = scalar_select %p1447_p7, 1, 0 }
  0x1b   : > { %s1825_s9 = scalar_select %p1452_p9, 1, 0 }
  0x1c   : > { %p1457_p11 = pnand %p927_p8, %p161_p10  ;;  %s1359_s11 = smov [#allocation8]  }
  0x1d   : > { %s175_s12 = sshll.u32 %s1359_s11, 4  ;;  %s44_s14 = sadd.s32 1, %s1352_s29  ;;  %s176_s12 = int_to_ptr.vmem [resolvable:$true] %s175_s12 }
  0x1e   : > { %s1826_s10 = scalar_select %p1457_p11, 1, 0 }
  0x1f   : > { %p1130_p12 = pneg %p1457_p11  ;;  %s1210_s17 = scalar_lea.hbm %s1815_s2, 8192 }
  0x20   : > { %p1211_p1 = scmp.ne.s32.totalorder %s1815_s2, %s1210_s17  ;;  %p1217_p8 = scmp.lt.u32.totalorder %s1210_s17, %s1815_s2 }
  0x21   : > { %p1466_p0 = pnand %p1130_p12, %p1437_p4 }
  0x23   : > { %p1212_p2 = pneg %p1466_p0 }
  0x25   : > { %p1213_p3 = pnand %p1212_p2, %p1211_p1 }
  0x27   : > { %p1214_p6 = pneg %p1213_p3 }
  0x29   : > { %p1219_p10 = pnand %p1217_p8, %p1214_p6 }
  0x2b   : > { %1222 = shalt.err (!%p1219_p10)
}
  0x2c   : > { %s1223_s22 = scalar_lea.vmem %s176_s12, 8192  ;;  %p1231_p4 = scmp.lt.s32.totalorder %s176_s12, %s176_s12 }
  0x2d   : > { %p1224_p12 = scmp.ne.s32.totalorder %s176_s12, %s1223_s22  ;;  %p1232_p7 = scmp.lt.s32.totalorder %s1223_s22, %s1223_s22 }
  0x2f   : > { %p1226_p13 = pnand %p1224_p12, %p1212_p2  ;;  %p1233_p11 = por %p1232_p7, %p1231_p4 }
  0x31   : > { %p1227_p9 = pneg %p1226_p13 }
  0x33   : > { %p1234_p5 = pnand %p1233_p11, %p1227_p9 }
  0x35   : > { %1237 = shalt.err (!%p1234_p5)
}
  0x36   : > { %s1360_s23 = smov 128   ;;  %s1361_s24 = smov 8  }
  0x37   : > { %1133 = dma.hbm_to_vmem [thread:$0]  (!%p1466_p0), %s1815_s2, 8192, %s176_s12, [#allocation9], %s1360_s23, %s1360_s23, %s1361_s24  }
  0x38   : > { %p46_p4 = scmp.ge.s32.totalorder %s44_s14, 2  ;;  %s53_s11 = sadd.s32 1, %s1344_s27 }
  0x39   : > { %p60_p5 = scmp.ne.s32.totalorder %s1344_s27, %s1340_s26  ;;  %p61_p7 = scmp.eq.s32.totalorder %s1356_s30, 0 }
  0x3a   : > { %s1843_s14 = smov (%p46_p4, %s44_s14), 0  ;;  %p1829_p11 = scmp.ne.s32.totalorder %s1823_s7, 0 }
  0x3b   : > { %p1496_p9 = por %p61_p7, %p60_p5  ;;  %s48_s16 = ssub.s32 %s1352_s29, %s1843_s14 }
  0x3c   : > { %p1502_p13 = por %p1829_p11, %p60_p5  ;;  %p1143_p1 = scmp.lt.s32.totalorder %s1356_s30, 2 }
  0x3d   : > { %p51_p0 = scmp.eq.s32.totalorder %s48_s16, 0  ;;  %s189_s12 = sand.u32 1, %s1344_s27  }
  0x3e   : > { %s930_s17 = sshll.u32 %s189_s12, 8  ;;  %s944_s19 = sshll.u32 %s1352_s29, 12 }
  0x3f   : > { %s1511_s18 = scalar_select %p51_p0, %s1344_s27, %s53_s11  }
  0x40   : > { %s1517_s22 = scalar_lea.hbm %s1814_s1, %s944_s19  ;;  %s193_s7 = scalar_lea.vmem [#allocation5], %s930_s17 }
  0x41   : > { %s202_s0 = sshll.u32 %s193_s7, 4  ;;  %p1523_p2 = pnand %p1143_p1, %p1496_p9  ;;  %s1519_s0 = int_to_ptr.vmem [resolvable:$true] %s202_s0 }
  0x42   : > { %s1527_s11 = scalar_lea.sflag [#allocation6], %s189_s12  ;;  %s1238_s16 = scalar_lea.hbm %s1517_s22, 4096 }
  0x43   : > { %p1239_p3 = scmp.ne.s32.totalorder %s1517_s22, %s1238_s16  ;;  %p1240_p6 = pneg %p1523_p2 }
  0x44   : > { %s1243_s15 = scalar_lea.hbm %s1814_s1, 8192  ;;  %p1244_p12 = scmp.lt.u32.totalorder %s1517_s22, %s1814_s1 }
  0x45   : > { %p1241_p8 = pnand %p1240_p6, %p1239_p3  ;;  %p1245_p4 = scmp.lt.u32.totalorder %s1243_s15, %s1238_s16 }
  0x46   : > { %p1247_p7 = scmp.lt.u32.totalorder %s1238_s16, %s1517_s22 }
  0x47   : > { %p1242_p10 = pneg %p1241_p8  ;;  %p1246_p5 = por %p1245_p4, %p1244_p12 }
  0x49   : > { %p1248_p9 = por %p1247_p7, %p1246_p5 }
  0x4b   : > { %p1249_p11 = pnand %p1248_p9, %p1242_p10 }
  0x4d   : > { %1252 = shalt.err (!%p1249_p11)
}
  0x4e   : > { %s1253_s12 = scalar_lea.vmem %s1519_s0, 4096  ;;  %s1362_s7 = smov [#allocation5]  }
  0x4f   : > { %p1254_p1 = scmp.ne.s32.totalorder %s1519_s0, %s1253_s12  ;;  %s1258_s17 = sshll.u32 %s1362_s7, 4  ;;  %s1259_s17 = int_to_ptr.vmem [resolvable:$false] %s1258_s17 }
  0x50   : > { %s1260_s19 = scalar_lea.vmem %s1259_s17, 8192  ;;  %p1261_p8 = scmp.lt.s32.totalorder %s1519_s0, %s1259_s17 }
  0x51   : > { %p1256_p0 = pnand %p1254_p1, %p1240_p6  ;;  %p1262_p12 = scmp.lt.s32.totalorder %s1260_s19, %s1253_s12 }
  0x53   : > { %p1257_p3 = pneg %p1256_p0  ;;  %p1263_p4 = por %p1262_p12, %p1261_p8 }
  0x55   : > { %p1264_p5 = pnand %p1263_p4, %p1257_p3 }
  0x57   : > { %1267 = shalt.err (!%p1264_p5)
}
  0x58   : > { %1137 = dma.hbm_to_vmem [thread:$0]  (!%p1523_p2), %s1517_s22, 4096, %s1519_s0, %s1527_s11, %s1360_s23, %s1360_s23, %s1361_s24  }
  0x59   : > { %p1832_p6 = scmp.ne.s32.totalorder %s1826_s10, 0 }
  0x5a   : > { %s1561_s16 = sand.u32 (!%p1832_p6), 1, %s1340_s26   ;;  %p1833_p10 = scmp.ne.s32.totalorder (!%p1832_p6), %s1824_s8, 0 }
  0x5b   : > { %223 = sbr.rel (%p1832_p6) target bundleno = 411 (0x19b), region = 32  ;;  %s934_s15 = sshll.u32 (!%p1832_p6), %s1561_s16, 8 }
  0x5c   : > { %s226_s20 = scalar_lea.sflag (!%p1832_p6), [#allocation6], %s1561_s16  ;;  %s1567_s5 = scalar_lea.vmem (!%p1832_p6), [#allocation5], %s934_s15 }
  0x62   : > { %1323 = dma.done.wait (%p1833_p10), %s226_s20, 4096  }
  0x63   : > { %1325 = vsyncadd (%p1833_p10), %s226_s20, 4294963200  ;;  %p1834_p2 = scmp.ne.s32.totalorder %s1822_s6, 0 }
  0x65   : > { %1327 = dma.done.wait (%p1834_p2), [#allocation9], 8192  }
  0x66   : > { %1329 = vsyncadd (%p1834_p2), [#allocation9], 4294959104  ;;  %s937_s10 = sshll.u32 %s1348_s28, 2  ;;  %v276_v0 = vld [vmem:[#allocation8] sm:$0xff]  ;;  %v277_v1 = vld [vmem:[#allocation8 + $0x8] sm:$0xff]  ;;  %p263_p7 = scmp.lt.s32.totalorder %s1348_s28, 1 }
  0x67   : > { %s275_s23 = sld [smem:[#allocation4 + %s937_s10]]  ;;  %s309_s24 = sadd.s32 1, %s937_s10  ;;  %v312_v3 = vld [vmem:[#allocation8 + $0x80] sm:$0xff]  ;;  %v313_v6 = vld [vmem:[#allocation8 + $0x88] sm:$0xff]  ;;  %v278_v15 = vld [vmem:[#allocation8 + $0x10] sm:$0xff] }
  0x68   : > { %s310_s22 = sld [smem:[#allocation4 + %s309_s24]]  ;;  %s361_s0 = sadd.s32 2, %s937_s10  ;;  %v364_v8 = vld [vmem:[#allocation8 + $0x100] sm:$0xff]  ;;  %v365_v9 = vld [vmem:[#allocation8 + $0x108] sm:$0xff]  ;;  %v279_v19 = vld [vmem:[#allocation8 + $0x18] sm:$0xff] }
  0x69   : > { %s362_s11 = sld [smem:[#allocation4 + %s361_s0]]  ;;  %s413_s21 = sadd.s32 3, %s937_s10  ;;  %v416_v13 = vld [vmem:[#allocation8 + $0x180] sm:$0xff]  ;;  %v417_v14 = vld [vmem:[#allocation8 + $0x188] sm:$0xff]  ;;  %v314_v21 = vld [vmem:[#allocation8 + $0x90] sm:$0xff] }
  0x6a   : > { %s414_s12 = sld [smem:[#allocation4 + %s413_s21]]  ;;  %v315_v22 = vld [vmem:[#allocation8 + $0x98] sm:$0xff]  ;;  %v366_v27 = vld [vmem:[#allocation8 + $0x110] sm:$0xff]  ;;  %v280_v35 = vld [vmem:[#allocation8 + $0x20] sm:$0xff]  ;;  %s1695_s19 = scalar_lea.vmem [#allocation10], %s934_s15 }
  0x6b   : > { %v367_v28 = vld [vmem:[#allocation8 + $0x118] sm:$0xff]  ;;  %v418_v29 = vld [vmem:[#allocation8 + $0x190] sm:$0xff]  ;;  %v281_v36 = vld [vmem:[#allocation8 + $0x28] sm:$0xff]  ;;  %s264_s6 = scalar_select %p263_p7, %s1348_s28, 1 }
  0x6c   : > { %v419_v34 = vld [vmem:[#allocation8 + $0x198] sm:$0xff]  ;;  %v316_v41 = vld [vmem:[#allocation8 + $0xa0] sm:$0xff]  ;;  %v317_v42 = vld [vmem:[#allocation8 + $0xa8] sm:$0xff]  ;;  %s945_s15 = sshll.u32 %s1348_s28, 12  ;;  %s810_s20 = sshll.u32 %s1695_s19, 4  ;;  %s1758_s20 = int_to_ptr.vmem [resolvable:$true] %s810_s20 }
  0x6d   : > { %v1578_v2 = vstv %s275_s23  ;;  %v368_v43 = vld [vmem:[#allocation8 + $0x120] sm:$0xff]  ;;  %v369_v48 = vld [vmem:[#allocation8 + $0x128] sm:$0xff]  ;;  %v282_v59 = vld [vmem:[#allocation8 + $0x30] sm:$0xff]  ;;  %s268_s17 = scalar_lea.vmem %s1816_s3, %s264_s6  ;;  %s1756_s10 = scalar_lea.hbm %s1817_s4, %s945_s15 }
  0x6e   : > { %v293_v4 = vmul.f32 %v1578_v2, %v276_v0  ;;  %v294_v5 = vmul.f32 %v1578_v2, %v277_v1  ;;  %v1582_v7 = vstv %s310_s22  ;;  %v295_v20 = vmul.f32 %v1578_v2, %v278_v15  ;;  %v420_v49 = vld [vmem:[#allocation8 + $0x1a0] sm:$0xff]  ;;  %v421_v54 = vld [vmem:[#allocation8 + $0x1a8] sm:$0xff]  ;;  %v283_v60 = vld [vmem:[#allocation8 + $0x38] sm:$0xff]  ;;  %s794_s23 = scalar_lea.sflag [#allocation7], %s1561_s16  ;;  %s1268_s24 = scalar_lea.vmem %s1758_s20, 4096 }
  0x6f   : > { %v329_v10 = vmul.f32 %v1582_v7, %v312_v3  ;;  %v330_v11 = vmul.f32 %v1582_v7, %v313_v6  ;;  %v1586_v12 = vstv %s362_s11  ;;  %v296_v30 = vmul.f32 %v1578_v2, %v279_v19  ;;  %v318_v1 = vld [vmem:[#allocation8 + $0xb0] sm:$0xff]  ;;  %p1269_p9 = scmp.ne.s32.totalorder %s1758_s20, %s1268_s24  ;;  %s1363_s22 = smov [#allocation10]  }
  0x70   : > { %v381_v16 = vmul.f32 %v1586_v12, %v364_v8  ;;  %v382_v17 = vmul.f32 %v1586_v12, %v365_v9  ;;  %v1590_v18 = vstv %s414_s12  ;;  %v331_v31 = vmul.f32 %v1582_v7, %v314_v21  ;;  %v319_v8 = vld [vmem:[#allocation8 + $0xb8] sm:$0xff]  ;;  %v370_v9 = vld [vmem:[#allocation8 + $0x130] sm:$0xff]  ;;  %v284_v21 = vld [vmem:[#allocation8 + $0x40] sm:$0xff]  ;;  %s1272_s0 = sshll.u32 %s1363_s22, 4  ;;  %s1273_s0 = int_to_ptr.vmem [resolvable:$false] %s1272_s0 }
  0x71   : > { %v345_v23 = vadd.f32 %v329_v10, %v293_v4  ;;  %v346_v24 = vadd.f32 %v330_v11, %v294_v5  ;;  %v433_v25 = vmul.f32 %v1590_v18, %v416_v13  ;;  %v434_v26 = vmul.f32 %v1590_v18, %v417_v14  ;;  %v371_v10 = vld [vmem:[#allocation8 + $0x138] sm:$0xff]  ;;  %v422_v15 = vld [vmem:[#allocation8 + $0x1b0] sm:$0xff]  ;;  %p1270_p11 = pnand %p1269_p9, %p1502_p13  ;;  %s1274_s11 = scalar_lea.vmem %s1273_s0, 8192 }
  0x72   : > { %v332_v32 = vmul.f32 %v1582_v7, %v315_v22  ;;  %v383_v33 = vmul.f32 %v1586_v12, %v366_v27  ;;  %v384_v39 = vmul.f32 %v1586_v12, %v367_v28  ;;  %v435_v40 = vmul.f32 %v1590_v18, %v418_v29  ;;  %v285_v22 = vld [vmem:[#allocation8 + $0x48] sm:$0xff]  ;;  %v320_v27 = vld [vmem:[#allocation8 + $0xc0] sm:$0xff]  ;;  %p1275_p0 = scmp.lt.s32.totalorder %s1758_s20, %s1273_s0  ;;  %p1276_p3 = scmp.lt.s32.totalorder %s1274_s11, %s1268_s24 }
  0x73   : > { %v397_v37 = vadd.f32 %v381_v16, %v345_v23  ;;  %v398_v38 = vadd.f32 %v382_v17, %v346_v24  ;;  %v347_v44 = vadd.f32 %v331_v31, %v295_v20  ;;  %v436_v46 = vmul.f32 %v1590_v18, %v419_v34  ;;  %v423_v20 = vld [vmem:[#allocation8 + $0x1b8] sm:$0xff]  ;;  %v321_v31 = vld [vmem:[#allocation8 + $0xc8] sm:$0xff]  ;;  %p1271_p1 = pneg %p1270_p11 }
  0x74   : > { %v348_v45 = vadd.f32 %v332_v32, %v296_v30  ;;  %v297_v47 = vmul.f32 %v1578_v2, %v280_v35  ;;  %v298_v52 = vmul.f32 %v1578_v2, %v281_v36  ;;  %v333_v53 = vmul.f32 %v1582_v7, %v316_v41  ;;  %v372_v32 = vld [vmem:[#allocation8 + $0x140] sm:$0xff]  ;;  %p1277_p8 = por %p1276_p3, %p1275_p0 }
  0x75   : > { %v449_v50 = vadd.f32 %v433_v25, %v397_v37  ;;  %v450_v51 = vadd.f32 %v434_v26, %v398_v38  ;;  %v399_v55 = vadd.f32 %v383_v33, %v347_v44  ;;  %v334_v57 = vmul.f32 %v1582_v7, %v317_v42  ;;  %v373_v33 = vld [vmem:[#allocation8 + $0x148] sm:$0xff]  ;;  %v424_v38 = vld [vmem:[#allocation8 + $0x1c0] sm:$0xff] }
  0x76   : > { %v400_v56 = vadd.f32 %v384_v39, %v348_v45  ;;  %v385_v58 = vmul.f32 %v1586_v12, %v368_v43  ;;  %v349_v62 = vadd.f32 %v333_v53, %v297_v47  ;;  %v386_v63 = vmul.f32 %v1586_v12, %v369_v48  ;;  %v425_v42 = vld [vmem:[#allocation8 + $0x1c8] sm:$0xff]  ;;  %v286_v43 = vld [vmem:[#allocation8 + $0x50] sm:$0xff]  ;;  %v287_v48 = vld [vmem:[#allocation8 + $0x58] sm:$0xff]  ;;  %p1278_p12 = pnand %p1277_p8, %p1271_p1 }
  0x77   : > { %v1074_v61 = vpack.c.bf16 %v450_v51, %v449_v50  ;;  %v437_v0 = vmul.f32 %v1590_v18, %v420_v49  ;;  %v451_v3 = vadd.f32 %v435_v40, %v399_v55  ;;  %v350_v5 = vadd.f32 %v334_v57, %v298_v52  ;;  %v322_v49 = vld [vmem:[#allocation8 + $0xd0] sm:$0xff]  ;;  %v323_v53 = vld [vmem:[#allocation8 + $0xd8] sm:$0xff] }
  0x78   : > { %v452_v4 = vadd.f32 %v436_v46, %v400_v56  ;;  %v438_v6 = vmul.f32 %v1590_v18, %v421_v54  ;;  %v401_v11 = vadd.f32 %v385_v58, %v349_v62  ;;  %v299_v13 = vmul.f32 %v1578_v2, %v282_v59  ;;  %v374_v54 = vld [vmem:[#allocation8 + $0x150] sm:$0xff]  ;;  %v375_v59 = vld [vmem:[#allocation8 + $0x158] sm:$0xff] }
  0x79   : > { %1075 = vmatprep.subr.bf16.mxu0 %v1074_v61  ;;  %1106 = vmatprep.subr.bf16.mxu1 %v1074_v61  ;;  %v300_v14 = vmul.f32 %v1578_v2, %v283_v60  ;;  %v402_v17 = vadd.f32 %v386_v63, %v350_v5  ;;  %v335_v19 = vmul.f32 %v1582_v7, %v318_v1  ;;  %v426_v60 = vld [vmem:[#allocation8 + $0x1d0] sm:$0xff]  ;;  %v481_v1 = vld [vmem:[%s1567_s5] sm:$0xff] }
  0x7a   : > { %1077 = vmatpush3.bf16.msra.mxu0 %v1074_v61  ;;  %1114 = vmatpush3.bf16.msra.mxu1 %v1074_v61  ;;  %v1078_v16 = vpack.c.bf16 %v452_v4, %v451_v3  ;;  %v453_v23 = vadd.f32 %v437_v0, %v401_v11  ;;  %v336_v24 = vmul.f32 %v1582_v7, %v319_v8  ;;  %v427_v0 = vld [vmem:[#allocation8 + $0x1d8] sm:$0xff]  ;;  %v497_v3 = vld [vmem:[%s1567_s5 + $0x80] sm:$0xff] }
  0x7b   : > { %v387_v25 = vmul.f32 %v1586_v12, %v370_v9  ;;  %v388_v26 = vmul.f32 %v1586_v12, %v371_v10  ;;  %v454_v28 = vadd.f32 %v438_v6, %v402_v17  ;;  %v351_v29 = vadd.f32 %v335_v19, %v299_v13  ;;  %v288_v9 = vld [vmem:[#allocation8 + $0x60] sm:$0xff]  ;;  %v289_v10 = vld [vmem:[#allocation8 + $0x68] sm:$0xff]  ;;  %1026 = vmatprep.mubr.f32.mxu0 %v481_v1 }
  0x7c   : > { %1079 = vmatprep.subr.bf16.mxu0 %v1078_v16  ;;  %1107 = vmatprep.subr.bf16.mxu1 %v1078_v16  ;;  %v439_v30 = vmul.f32 %v1590_v18, %v422_v15  ;;  %v352_v34 = vadd.f32 %v336_v24, %v300_v14  ;;  %v440_v35 = vmul.f32 %v1590_v18, %v423_v20  ;;  %v325_v17 = vld [vmem:[#allocation8 + $0xe8] sm:$0xff]  ;;  %v428_v24 = vld [vmem:[#allocation8 + $0x1e0] sm:$0xff] }
  0x7d   : > { %v301_v36 = vmul.f32 %v1578_v2, %v284_v21  ;;  %v302_v37 = vmul.f32 %v1578_v2, %v285_v22  ;;  %v1082_v39 = vpack.c.bf16 %v454_v28, %v453_v23  ;;  %v403_v40 = vadd.f32 %v387_v25, %v351_v29  ;;  %1050 = vmatprep.mubr.f32.mxu1 %v497_v3  ;;  %v376_v22 = vld [vmem:[#allocation8 + $0x160] sm:$0xff]  ;;  %v377_v23 = vld [vmem:[#allocation8 + $0x168] sm:$0xff] }
  0x7e   : > { %1081 = vmatpush3.bf16.msra.mxu0 %v1078_v16  ;;  %1115 = vmatpush3.bf16.msra.mxu1 %v1078_v16  ;;  %v337_v41 = vmul.f32 %v1582_v7, %v320_v27  ;;  %v404_v44 = vadd.f32 %v388_v26, %v352_v34  ;;  %v338_v45 = vmul.f32 %v1582_v7, %v321_v31  ;;  %v324_v16 = vld [vmem:[#allocation8 + $0xe0] sm:$0xff]  ;;  %v291_v34 = vld [vmem:[#allocation8 + $0x78] sm:$0xff] }
  0x7f   : > { %v389_v46 = vmul.f32 %v1586_v12, %v372_v32  ;;  %v390_v47 = vmul.f32 %v1586_v12, %v373_v33  ;;  %1083 = vmatprep.subr.bf16.mxu0 %v1082_v39  ;;  %1108 = vmatprep.subr.bf16.mxu1 %v1082_v39  ;;  %v455_v50 = vadd.f32 %v439_v30, %v403_v40  ;;  %v429_v32 = vld [vmem:[#allocation8 + $0x1e8] sm:$0xff]  ;;  %v290_v33 = vld [vmem:[#allocation8 + $0x70] sm:$0xff]  ;;  %v327_v40 = vld [vmem:[#allocation8 + $0xf8] sm:$0xff] }
  0x80   : > { %v353_v51 = vadd.f32 %v337_v41, %v301_v36  ;;  %v441_v52 = vmul.f32 %v1590_v18, %v424_v38  ;;  %v456_v55 = vadd.f32 %v440_v35, %v404_v44  ;;  %v354_v56 = vadd.f32 %v338_v45, %v302_v37  ;;  %v378_v44 = vld [vmem:[#allocation8 + $0x170] sm:$0xff]  ;;  %v379_v45 = vld [vmem:[#allocation8 + $0x178] sm:$0xff] }
  0x81   : > { %v442_v57 = vmul.f32 %v1590_v18, %v425_v42  ;;  %v303_v58 = vmul.f32 %v1578_v2, %v286_v43  ;;  %v304_v62 = vmul.f32 %v1578_v2, %v287_v48  ;;  %v339_v63 = vmul.f32 %v1582_v7, %v322_v49 }
  0x82   : > { %1085 = vmatpush3.bf16.msra.mxu0 %v1082_v39  ;;  %1116 = vmatpush3.bf16.msra.mxu1 %v1082_v39  ;;  %v405_v61 = vadd.f32 %v389_v46, %v353_v51  ;;  %v1086_v4 = vpack.c.bf16 %v456_v55, %v455_v50  ;;  %v406_v5 = vadd.f32 %v390_v47, %v354_v56  ;;  %v326_v39 = vld [vmem:[#allocation8 + $0xf0] sm:$0xff] }
  0x83   : > { %v340_v6 = vmul.f32 %v1582_v7, %v323_v53  ;;  %v391_v8 = vmul.f32 %v1586_v12, %v374_v54  ;;  %v355_v13 = vadd.f32 %v339_v63, %v303_v58  ;;  %v392_v14 = vmul.f32 %v1586_v12, %v375_v59  ;;  %v430_v46 = vld [vmem:[#allocation8 + $0x1f0] sm:$0xff]  ;;  %v431_v54 = vld [vmem:[#allocation8 + $0x1f8] sm:$0xff] }
  0x84   : > { %v457_v11 = vadd.f32 %v441_v52, %v405_v61  ;;  %v443_v15 = vmul.f32 %v1590_v18, %v426_v60  ;;  %1087 = vmatprep.subr.bf16.mxu0 %v1086_v4  ;;  %1109 = vmatprep.subr.bf16.mxu1 %v1086_v4  ;;  %v458_v19 = vadd.f32 %v442_v57, %v406_v5  ;;  %v483_v5 = vld [vmem:[%s1567_s5 + $0x10] sm:$0xff] }
  0x85   : > { %v356_v20 = vadd.f32 %v340_v6, %v304_v62  ;;  %v444_v21 = vmul.f32 %v1590_v18, %v427_v0  ;;  %v407_v25 = vadd.f32 %v391_v8, %v355_v13  ;;  %v305_v26 = vmul.f32 %v1578_v2, %v288_v9  ;;  %v499_v6 = vld [vmem:[%s1567_s5 + $0x90] sm:$0xff]  ;;  %v484_v8 = vld [vmem:[%s1567_s5 + $0x18] sm:$0xff]  ;;  %v486_v13 = vld [vmem:[%s1567_s5 + $0x28] sm:$0xff] }
  0x86   : > { %1089 = vmatpush3.bf16.msra.mxu0 %v1086_v4  ;;  %1117 = vmatpush3.bf16.msra.mxu1 %v1086_v4  ;;  %v306_v27 = vmul.f32 %v1578_v2, %v289_v10  ;;  %v1090_v28 = vpack.c.bf16 %v458_v19, %v457_v11  ;;  %v341_v30 = vmul.f32 %v1582_v7, %v324_v16  ;;  %v498_v4 = vld [vmem:[%s1567_s5 + $0x88] sm:$0xff]  ;;  %v500_v9 = vld [vmem:[%s1567_s5 + $0x98] sm:$0xff]  ;;  %v485_v10 = vld [vmem:[%s1567_s5 + $0x20] sm:$0xff] }
  0x87   : > { %v408_v29 = vadd.f32 %v392_v14, %v356_v20  ;;  %v342_v31 = vmul.f32 %v1582_v7, %v325_v17  ;;  %v459_v35 = vadd.f32 %v443_v15, %v407_v25  ;;  %v393_v36 = vmul.f32 %v1586_v12, %v376_v22  ;;  %v501_v11 = vld [vmem:[%s1567_s5 + $0xa0] sm:$0xff]  ;;  %v502_v14 = vld [vmem:[%s1567_s5 + $0xa8] sm:$0xff]  ;;  %v487_v15 = vld [vmem:[%s1567_s5 + $0x30] sm:$0xff] }
  0x88   : > { %v394_v37 = vmul.f32 %v1586_v12, %v377_v23  ;;  %v445_v38 = vmul.f32 %v1590_v18, %v428_v24  ;;  %1091 = vmatprep.subr.bf16.mxu0 %v1090_v28  ;;  %1110 = vmatprep.subr.bf16.mxu1 %v1090_v28  ;;  %v357_v42 = vadd.f32 %v341_v30, %v305_v26  ;;  %v503_v16 = vld [vmem:[%s1567_s5 + $0xb0] sm:$0xff]  ;;  %v488_v17 = vld [vmem:[%s1567_s5 + $0x38] sm:$0xff]  ;;  %v489_v20 = vld [vmem:[%s1567_s5 + $0x40] sm:$0xff] }
  0x89   : > { %v460_v41 = vadd.f32 %v444_v21, %v408_v29  ;;  %v358_v43 = vadd.f32 %v342_v31, %v306_v27  ;;  %v446_v47 = vmul.f32 %v1590_v18, %v429_v32  ;;  %v307_v48 = vmul.f32 %v1578_v2, %v290_v33  ;;  %v504_v19 = vld [vmem:[%s1567_s5 + $0xb8] sm:$0xff]  ;;  %v505_v21 = vld [vmem:[%s1567_s5 + $0xc0] sm:$0xff]  ;;  %v490_v22 = vld [vmem:[%s1567_s5 + $0x48] sm:$0xff] }
  0x8a   : > { %1093 = vmatpush3.bf16.msra.mxu0 %v1090_v28  ;;  %1118 = vmatpush3.bf16.msra.mxu1 %v1090_v28  ;;  %v308_v49 = vmul.f32 %v1578_v2, %v291_v34  ;;  %v409_v51 = vadd.f32 %v393_v36, %v357_v42  ;;  %v343_v53 = vmul.f32 %v1582_v7, %v326_v39  ;;  %v506_v23 = vld [vmem:[%s1567_s5 + $0xc8] sm:$0xff]  ;;  %v491_v24 = vld [vmem:[%s1567_s5 + $0x50] sm:$0xff]  ;;  %v492_v26 = vld [vmem:[%s1567_s5 + $0x58] sm:$0xff] }
  0x8b   : > { %v1094_v50 = vpack.c.bf16 %v460_v41, %v459_v35  ;;  %v410_v52 = vadd.f32 %v394_v37, %v358_v43  ;;  %v344_v55 = vmul.f32 %v1582_v7, %v327_v40  ;;  %v395_v56 = vmul.f32 %v1586_v12, %v378_v44  ;;  %v507_v25 = vld [vmem:[%s1567_s5 + $0xd0] sm:$0xff]  ;;  %v508_v27 = vld [vmem:[%s1567_s5 + $0xd8] sm:$0xff]  ;;  %v493_v28 = vld [vmem:[%s1567_s5 + $0x60] sm:$0xff] }
  0x8c   : > { %v396_v57 = vmul.f32 %v1586_v12, %v379_v45  ;;  %v447_v58 = vmul.f32 %v1590_v18, %v430_v46  ;;  %v461_v59 = vadd.f32 %v445_v38, %v409_v51  ;;  %v359_v61 = vadd.f32 %v343_v53, %v307_v48  ;;  %v509_v29 = vld [vmem:[%s1567_s5 + $0xe0] sm:$0xff]  ;;  %v494_v30 = vld [vmem:[%s1567_s5 + $0x68] sm:$0xff]  ;;  %v495_v32 = vld [vmem:[%s1567_s5 + $0x70] sm:$0xff] }
  0x8d   : > { %1095 = vmatprep.subr.bf16.mxu0 %v1094_v50  ;;  %1111 = vmatprep.subr.bf16.mxu1 %v1094_v50  ;;  %v462_v60 = vadd.f32 %v446_v47, %v410_v52  ;;  %v360_v2 = vadd.f32 %v344_v55, %v308_v49  ;;  %v448_v62 = vmul.f32 %v1590_v18, %v431_v54  ;;  %v482_v18 = vld [vmem:[%s1567_s5 + $0x8] sm:$0xff]  ;;  %v511_v33 = vld [vmem:[%s1567_s5 + $0xf0] sm:$0xff]  ;;  %v496_v34 = vld [vmem:[%s1567_s5 + $0x78] sm:$0xff] }
  0x8e   : > { %1097 = vmatpush3.bf16.msra.mxu0 %v1094_v50  ;;  %1119 = vmatpush3.bf16.msra.mxu1 %v1094_v50  ;;  %v411_v7 = vadd.f32 %v395_v56, %v359_v61  ;;  %v510_v31 = vld [vmem:[%s1567_s5 + $0xe8] sm:$0xff]  ;;  %v512_v35 = vld [vmem:[%s1567_s5 + $0xf8] sm:$0xff] }
  0x8f   : > { %v1098_v63 = vpack.c.bf16 %v462_v60, %v461_v59  ;;  %v412_v0 = vadd.f32 %v396_v57, %v360_v2  ;;  %v1687_v36 = vld [vmem:[%s268_s17] ss:$0 sm:$0xff] }
  0x90   : > { %v463_v12 = vadd.f32 %v447_v58, %v411_v7 }
  0x91   : > { %1099 = vmatprep.subr.bf16.mxu0 %v1098_v63  ;;  %1112 = vmatprep.subr.bf16.mxu1 %v1098_v63  ;;  %v464_v1 = vadd.f32 %v448_v62, %v412_v0 }
  0x92   : > { %1101 = vmatpush3.bf16.msra.mxu0 %v1098_v63  ;;  %1120 = vmatpush3.bf16.msra.mxu1 %v1098_v63 }
  0x93   : > { %v1102_v3 = vpack.c.bf16 %v464_v1, %v463_v12 }
  0x95   : > { %1103 = vmatprep.subr.bf16.mxu0 %v1102_v3  ;;  %1113 = vmatprep.subr.bf16.mxu1 %v1102_v3 }
  0x96   : > { %1105 = vmatpush3.bf16.msra.mxu0 %v1102_v3  ;;  %1121 = vmatpush3.bf16.msra.mxu1 %v1102_v3 }
  0x99   : > { %1027 = vmatmul.mubr.f32.vlgmr.msra.gmra.mrb[0].mxu0 %v482_v18  ;;  %1051 = vmatmul.mubr.f32.vlgmr.msra.gmra.mrb[0].mxu1 %v498_v4 }
  0x9a   : > { %1029 = vmatprep.mubr.f32.mxu0 %v483_v5  ;;  %1053 = vmatprep.mubr.f32.mxu1 %v499_v6 }
  0x9d   : > { %1030 = vmatmul.mubr.f32.gmra.mrb[2].mxu0 %v484_v8  ;;  %1054 = vmatmul.mubr.f32.gmra.mrb[2].mxu1 %v500_v9 }
  0x9e   : > { %1032 = vmatprep.mubr.f32.mxu0 %v485_v10  ;;  %1056 = vmatprep.mubr.f32.mxu1 %v501_v11 }
  0xa1   : > { %1033 = vmatmul.mubr.f32.gmra.mrb[4].mxu0 %v486_v13  ;;  %1057 = vmatmul.mubr.f32.gmra.mrb[4].mxu1 %v502_v14 }
  0xa2   : > { %1035 = vmatprep.mubr.f32.mxu0 %v487_v15  ;;  %1059 = vmatprep.mubr.f32.mxu1 %v503_v16 }
  0xa5   : > { %1036 = vmatmul.mubr.f32.gmra.mrb[6].mxu0 %v488_v17  ;;  %1060 = vmatmul.mubr.f32.gmra.mrb[6].mxu1 %v504_v19 }
  0xa6   : > { %1038 = vmatprep.mubr.f32.mxu0 %v489_v20  ;;  %1062 = vmatprep.mubr.f32.mxu1 %v505_v21 }
  0xa9   : > { %1039 = vmatmul.mubr.f32.gmra.mrb[8].mxu0 %v490_v22  ;;  %1063 = vmatmul.mubr.f32.gmra.mrb[8].mxu1 %v506_v23 }
  0xaa   : > { %1041 = vmatprep.mubr.f32.mxu0 %v491_v24  ;;  %1065 = vmatprep.mubr.f32.mxu1 %v507_v25 }
  0xad   : > { %1042 = vmatmul.mubr.f32.gmra.mrb[10].mxu0 %v492_v26  ;;  %1066 = vmatmul.mubr.f32.gmra.mrb[10].mxu1 %v508_v27 }
  0xae   : > { %1044 = vmatprep.mubr.f32.mxu0 %v493_v28  ;;  %1068 = vmatprep.mubr.f32.mxu1 %v509_v29 }
  0xb1   : > { %1045 = vmatmul.mubr.f32.gmra.mrb[12].mxu0 %v494_v30  ;;  %1069 = vmatmul.mubr.f32.gmra.mrb[12].mxu1 %v510_v31 }
  0xb2   : > { %1047 = vmatprep.mubr.f32.mxu0 %v495_v32  ;;  %1071 = vmatprep.mubr.f32.mxu1 %v511_v33 }
  0xb5   : > { %1048 = vmatmul.mubr.f32.gmra.mrb[14].mxu0 %v496_v34  ;;  %1072 = vmatmul.mubr.f32.gmra.mrb[14].mxu1 %v512_v35 }
 0x16c   : > { %v1028_v37 = vpop.f32.mrb[0].mxu0  ;;  %v1052_v38 = vpop.f32.mrb[0].mxu1 }
 0x16d   : > { %v608_v39 = vadd.f32 %v1028_v37, %v1687_v36  ;;  %v688_v40 = vadd.f32 %v1052_v38, %v1687_v36  ;;  %v602_v41 = vpop.f32.mrb[1].mxu0  ;;  %v682_v42 = vpop.f32.mrb[1].mxu1 }
 0x16e   : > { %v603_v43 = vadd.f32 %v1687_v36, %v602_v41  ;;  %v683_v44 = vadd.f32 %v1687_v36, %v682_v42 }
 0x16f   : > { %762 = vst [vmem:[%s1695_s19 + $0x8] sm:$0xff] %v608_v39  ;;  %778 = vst [vmem:[%s1695_s19 + $0x88] sm:$0xff] %v688_v40 }
 0x170   : > { %761 = vst [vmem:[%s1695_s19] sm:$0xff] %v603_v43  ;;  %777 = vst [vmem:[%s1695_s19 + $0x80] sm:$0xff] %v683_v44  ;;  %v1031_v45 = vpop.f32.mrb[2].mxu0  ;;  %v1055_v46 = vpop.f32.mrb[2].mxu1 }
 0x171   : > { %v618_v47 = vadd.f32 %v1031_v45, %v1687_v36  ;;  %v698_v48 = vadd.f32 %v1055_v46, %v1687_v36  ;;  %v612_v49 = vpop.f32.mrb[3].mxu0  ;;  %v692_v50 = vpop.f32.mrb[3].mxu1 }
 0x172   : > { %v613_v51 = vadd.f32 %v1687_v36, %v612_v49  ;;  %v693_v52 = vadd.f32 %v1687_v36, %v692_v50 }
 0x173   : > { %764 = vst [vmem:[%s1695_s19 + $0x18] sm:$0xff] %v618_v47  ;;  %780 = vst [vmem:[%s1695_s19 + $0x98] sm:$0xff] %v698_v48 }
 0x174   : > { %763 = vst [vmem:[%s1695_s19 + $0x10] sm:$0xff] %v613_v51  ;;  %779 = vst [vmem:[%s1695_s19 + $0x90] sm:$0xff] %v693_v52  ;;  %v1034_v53 = vpop.f32.mrb[4].mxu0  ;;  %v1058_v54 = vpop.f32.mrb[4].mxu1 }
 0x175   : > { %v628_v55 = vadd.f32 %v1034_v53, %v1687_v36  ;;  %v708_v56 = vadd.f32 %v1058_v54, %v1687_v36  ;;  %v622_v57 = vpop.f32.mrb[5].mxu0  ;;  %v702_v58 = vpop.f32.mrb[5].mxu1 }
 0x176   : > { %v623_v59 = vadd.f32 %v1687_v36, %v622_v57  ;;  %v703_v60 = vadd.f32 %v1687_v36, %v702_v58 }
 0x177   : > { %766 = vst [vmem:[%s1695_s19 + $0x28] sm:$0xff] %v628_v55  ;;  %782 = vst [vmem:[%s1695_s19 + $0xa8] sm:$0xff] %v708_v56 }
 0x178   : > { %765 = vst [vmem:[%s1695_s19 + $0x20] sm:$0xff] %v623_v59  ;;  %781 = vst [vmem:[%s1695_s19 + $0xa0] sm:$0xff] %v703_v60  ;;  %v1037_v61 = vpop.f32.mrb[6].mxu0  ;;  %v1061_v2 = vpop.f32.mrb[6].mxu1 }
 0x179   : > { %v638_v62 = vadd.f32 %v1037_v61, %v1687_v36  ;;  %v718_v63 = vadd.f32 %v1061_v2, %v1687_v36  ;;  %v632_v7 = vpop.f32.mrb[7].mxu0  ;;  %v712_v0 = vpop.f32.mrb[7].mxu1 }
 0x17a   : > { %v633_v12 = vadd.f32 %v1687_v36, %v632_v7  ;;  %v713_v1 = vadd.f32 %v1687_v36, %v712_v0 }
 0x17b   : > { %768 = vst [vmem:[%s1695_s19 + $0x38] sm:$0xff] %v638_v62  ;;  %784 = vst [vmem:[%s1695_s19 + $0xb8] sm:$0xff] %v718_v63 }
 0x17c   : > { %767 = vst [vmem:[%s1695_s19 + $0x30] sm:$0xff] %v633_v12  ;;  %783 = vst [vmem:[%s1695_s19 + $0xb0] sm:$0xff] %v713_v1  ;;  %v1040_v3 = vpop.f32.mrb[8].mxu0  ;;  %v1064_v18 = vpop.f32.mrb[8].mxu1 }
 0x17d   : > { %v648_v4 = vadd.f32 %v1040_v3, %v1687_v36  ;;  %v728_v5 = vadd.f32 %v1064_v18, %v1687_v36  ;;  %v642_v6 = vpop.f32.mrb[9].mxu0  ;;  %v722_v8 = vpop.f32.mrb[9].mxu1 }
 0x17e   : > { %v643_v9 = vadd.f32 %v1687_v36, %v642_v6  ;;  %v723_v10 = vadd.f32 %v1687_v36, %v722_v8 }
 0x17f   : > { %770 = vst [vmem:[%s1695_s19 + $0x48] sm:$0xff] %v648_v4  ;;  %786 = vst [vmem:[%s1695_s19 + $0xc8] sm:$0xff] %v728_v5 }
 0x180   : > { %769 = vst [vmem:[%s1695_s19 + $0x40] sm:$0xff] %v643_v9  ;;  %785 = vst [vmem:[%s1695_s19 + $0xc0] sm:$0xff] %v723_v10  ;;  %v1043_v11 = vpop.f32.mrb[10].mxu0  ;;  %v1067_v13 = vpop.f32.mrb[10].mxu1 }
 0x181   : > { %v658_v14 = vadd.f32 %v1043_v11, %v1687_v36  ;;  %v738_v15 = vadd.f32 %v1067_v13, %v1687_v36  ;;  %v652_v16 = vpop.f32.mrb[11].mxu0  ;;  %v732_v17 = vpop.f32.mrb[11].mxu1 }
 0x182   : > { %v653_v19 = vadd.f32 %v1687_v36, %v652_v16  ;;  %v733_v20 = vadd.f32 %v1687_v36, %v732_v17 }
 0x183   : > { %772 = vst [vmem:[%s1695_s19 + $0x58] sm:$0xff] %v658_v14  ;;  %788 = vst [vmem:[%s1695_s19 + $0xd8] sm:$0xff] %v738_v15 }
 0x184   : > { %771 = vst [vmem:[%s1695_s19 + $0x50] sm:$0xff] %v653_v19  ;;  %787 = vst [vmem:[%s1695_s19 + $0xd0] sm:$0xff] %v733_v20  ;;  %v1046_v21 = vpop.f32.mrb[12].mxu0  ;;  %v1070_v22 = vpop.f32.mrb[12].mxu1 }
 0x185   : > { %v668_v23 = vadd.f32 %v1046_v21, %v1687_v36  ;;  %v748_v24 = vadd.f32 %v1070_v22, %v1687_v36  ;;  %v662_v25 = vpop.f32.mrb[13].mxu0  ;;  %v742_v26 = vpop.f32.mrb[13].mxu1 }
 0x186   : > { %v663_v27 = vadd.f32 %v1687_v36, %v662_v25  ;;  %v743_v28 = vadd.f32 %v1687_v36, %v742_v26 }
 0x187   : > { %774 = vst [vmem:[%s1695_s19 + $0x68] sm:$0xff] %v668_v23  ;;  %790 = vst [vmem:[%s1695_s19 + $0xe8] sm:$0xff] %v748_v24 }
 0x188   : > { %773 = vst [vmem:[%s1695_s19 + $0x60] sm:$0xff] %v663_v27  ;;  %789 = vst [vmem:[%s1695_s19 + $0xe0] sm:$0xff] %v743_v28  ;;  %v1049_v29 = vpop.f32.mrb[14].mxu0  ;;  %v1073_v30 = vpop.f32.mrb[14].mxu1 }
 0x189   : > { %v678_v31 = vadd.f32 %v1049_v29, %v1687_v36  ;;  %v758_v32 = vadd.f32 %v1073_v30, %v1687_v36  ;;  %v672_v33 = vpop.f32.mrb[15].mxu0  ;;  %v752_v34 = vpop.f32.mrb[15].mxu1 }
 0x18a   : > { %v673_v35 = vadd.f32 %v1687_v36, %v672_v33  ;;  %v753_v37 = vadd.f32 %v1687_v36, %v752_v34 }
 0x18b   : > { %776 = vst [vmem:[%s1695_s19 + $0x78] sm:$0xff] %v678_v31  ;;  %792 = vst [vmem:[%s1695_s19 + $0xf8] sm:$0xff] %v758_v32 }
 0x18c   : > { %775 = vst [vmem:[%s1695_s19 + $0x70] sm:$0xff] %v673_v35  ;;  %791 = vst [vmem:[%s1695_s19 + $0xf0] sm:$0xff] %v753_v37 }
 0x18d   : > { %1281 = shalt.err (!%p1278_p12)
}
 0x18e   : > { %s1282_s21 = scalar_lea.hbm %s1756_s10, 4096  ;;  %s1286_s8 = scalar_lea.hbm %s1817_s4, 8192 }
 0x18f   : > { %p1283_p4 = scmp.ne.s32.totalorder %s1756_s10, %s1282_s21  ;;  %p1287_p10 = scmp.lt.u32.totalorder %s1756_s10, %s1817_s4 }
 0x190   : > { %p1288_p2 = scmp.lt.u32.totalorder %s1286_s8, %s1282_s21  ;;  %p1290_p9 = scmp.lt.u32.totalorder %s1282_s21, %s1756_s10 }
 0x191   : > { %p1284_p5 = pnand %p1283_p4, %p1502_p13 }
 0x192   : > { %p1289_p7 = por %p1288_p2, %p1287_p10 }
 0x193   : > { %p1285_p6 = pneg %p1284_p5 }
 0x194   : > { %p1291_p11 = por %p1290_p9, %p1289_p7 }
 0x196   : > { %p1292_p1 = pnand %p1291_p11, %p1285_p6 }
 0x198   : > { %1295 = shalt.err (!%p1292_p1)
}
 0x199   : > { %s1364_s19 = smov 128   ;;  %s1365_s15 = smov 8  }
 0x19a   : > { %1128 = dma.vmem_to_hbm [thread:$0]  (%p1502_p13), %s1758_s20, 4096, %s1756_s10, %s794_s23, %s1364_s19, %s1364_s19, %s1365_s15  }
 0x19b PF: > { %s825_s28 = sand.u32 1, %s1336_s25   ;;  %p1835_p0 = scmp.ne.s32.totalorder %s1825_s9, 0 }
 0x19c   : > { %p1836_p3 = scmp.ge.s32.totalorder %s1356_s30, 2  ;;  %s826_s5 = scalar_lea.sflag [#allocation7], %s825_s28 }
 0x19e   : > { %p1139_p8 = pnand %p1836_p3, %p1835_p0 }
 0x1a0   : > { %1331 = dma.done.wait (!%p1139_p8), %s826_s5, 4096  }
 0x1a1   : > { %1333 = vsyncadd (!%p1139_p8), %s826_s5, 4294963200  ;;  %s25_s30 = sadd.s32 1, %s1356_s30   ;;  %s1837_s25 = smov %s1340_s26 }
 0x1a2   : > { %p22_p12 = scmp.ge.s32.totalorder %s25_s30, 4   ;;  %s1838_s26 = smov %s1344_s27 }
 0x1a3   : > { %s1839_s27 = smov %s1511_s18  ;;  %s1840_s28 = smov %s1352_s29 }
 0x1a4   : > { %s1841_s29 = smov %s1843_s14  ;;  %24 = sbr.rel (!%p22_p12) target bundleno = 19 (0x13), region = 92 }
 0x1ab   :  { %831 = vsyncpa [#allocation6], 1 }
 0x1ac   :  { %833 = vsyncpa [#allocation6 + $0x1], 1 }
 0x1ad   :  { %834 = vsyncpa [#allocation9], 1 }
 0x1ae   :  { %835 = vsyncpa [#allocation7], 1 }
 0x1af   :  { %837 = vsyncpa [#allocation7 + $0x1], 1 }

// kernel: tpu_custom_call.1
= control target key start
LH: loop header
LB: loop body
LE: loop exit
PB: predicated region body
PF: predicated region fallthrough
CT: control target
= control target key end

     0   :  { %s1813_s0 = inlined_call_operand.hbm [shape: f32[8], index: 0, kind: input, shape index: {}]   ;;  %s1814_s1 = inlined_call_operand.hbm [shape: f32[2,256,128], index: 1, kind: input, shape index: {}]   ;;  %s1815_s2 = inlined_call_operand.hbm [shape: f32[4,128,128], index: 2, kind: input, shape index: {}]   ;;  %s1816_s3 = inlined_call_operand.vmem [shape: f32[2,1,128], index: 3, kind: input, shape index: {}]   ;;  %s1817_s4 = inlined_call_operand.hbm [shape: f32[2,256,128], index: 4, kind: output, shape index: {}]  }
   0x1   :  { %s1200_s17 = scalar_lea.hbm %s1813_s0, 16 }
   0x2   :  { %p1201_p0 = scmp.ne.s32.totalorder %s1813_s0, %s1200_s17  ;;  %p1204_p1 = scmp.lt.u32.totalorder %s1200_s17, %s1813_s0 }
   0x4   :  { %p1206_p2 = pnand %p1204_p1, %p1201_p0 }
   0x6   :  { %1209 = shalt.err (!%p1206_p2)  }
   0x7   :  { %s1358_s22 = smov [#allocation4]  }
   0x8   :  { %10 = dma.hbm_to_smem %s1813_s0, 16, %s1358_s22, [#allocation3] }
   0x9   :  { %1320 = dma.done.wait [#allocation3], 16 }
   0xa   :  { %1321 = vsyncadd [#allocation3], 4294967280 }
   0xb   :  { %12 = sfence }
   0xc   :  { %13 = vsyncpa [#allocation6], 0 }
   0xd   :  { %15 = vsyncpa [#allocation6 + $0x1], 0 }
   0xe   :  { %16 = vsyncpa [#allocation9], 0 }
   0xf   :  { %17 = vsyncpa [#allocation7], 0 }
  0x10   :  { %19 = vsyncpa [#allocation7 + $0x1], 0  ;;  %s1403_s25 = smov 0   ;;  %s1405_s26 = smov 0  }
  0x11   :  { %s1407_s27 = smov 0   ;;  %s1409_s28 = smov 0  }
  0x12   :  { %s1411_s29 = smov 0   ;;  %s1413_s30 = smov 0  }
  0x13 LB: > { %s925_s0 = sadd.s32 4294967295, %s1356_s30   ;;  %s926_s5 = sadd.s32 4294967294, %s1356_s30   ;;  %s1356_s30 = sphi %s1413_s30, %s25_s30   ;;  %s1352_s29 = sphi %s1411_s29, %s1841_s29   ;;  %s1348_s28 = sphi %s1409_s28, %s1840_s28   ;;  %s1344_s27 = sphi %s1407_s27, %s1839_s27   ;;  %s1340_s26 = sphi %s1405_s26, %s1838_s26   ;;  %s1336_s25 = sphi %s1403_s25, %s1837_s25  }
  0x14   : > { %p66_p3 = scmp.ne.s32.totalorder %s1340_s26, %s1336_s25  ;;  %p1437_p4 = scmp.eq.s32.totalorder %s925_s0, 0 }
  0x15   : > { %p1441_p5 = scmp.eq.s32.totalorder %s925_s0, 1  ;;  %p154_p6 = scmp.eq.s32.totalorder %s926_s5, 1 }
  0x16   : > { %s1822_s6 = scalar_select %p1437_p4, 1, 0 }
  0x17   : > { %s1823_s7 = scalar_select %p1441_p5, 1, 0 }
  0x18   : > { %p1447_p7 = por %p1437_p4, %p66_p3  ;;  %p927_p8 = scmp.ge.s32.totalorder %s1356_s30, 1 }
  0x19   : > { %p1452_p9 = por %p154_p6, %p66_p3  ;;  %p161_p10 = scmp.lt.s32.totalorder %s1356_s30, 3 }
  0x1a   : > { %s1824_s8 = scalar_select %p1447_p7, 1, 0 }
  0x1b   : > { %s1825_s9 = scalar_select %p1452_p9, 1, 0 }
  0x1c   : > { %p1457_p11 = pnand %p927_p8, %p161_p10  ;;  %s1359_s11 = smov [#allocation8]  }
  0x1d   : > { %s175_s12 = sshll.u32 %s1359_s11, 4  ;;  %s44_s14 = sadd.s32 1, %s1352_s29  ;;  %s176_s12 = int_to_ptr.vmem [resolvable:$true] %s175_s12 }
  0x1e   : > { %s1826_s10 = scalar_select %p1457_p11, 1, 0 }
  0x1f   : > { %p1130_p12 = pneg %p1457_p11  ;;  %s1210_s17 = scalar_lea.hbm %s1815_s2, 8192 }
  0x20   : > { %p1211_p1 = scmp.ne.s32.totalorder %s1815_s2, %s1210_s17  ;;  %p1217_p8 = scmp.lt.u32.totalorder %s1210_s17, %s1815_s2 }
  0x21   : > { %p1466_p0 = pnand %p1130_p12, %p1437_p4 }
  0x23   : > { %p1212_p2 = pneg %p1466_p0 }
  0x25   : > { %p1213_p3 = pnand %p1212_p2, %p1211_p1 }
  0x27   : > { %p1214_p6 = pneg %p1213_p3 }
  0x29   : > { %p1219_p10 = pnand %p1217_p8, %p1214_p6 }
  0x2b   : > { %1222 = shalt.err (!%p1219_p10)
}
  0x2c   : > { %s1223_s22 = scalar_lea.vmem %s176_s12, 8192  ;;  %p1231_p4 = scmp.lt.s32.totalorder %s176_s12, %s176_s12 }
  0x2d   : > { %p1224_p12 = scmp.ne.s32.totalorder %s176_s12, %s1223_s22  ;;  %p1232_p7 = scmp.lt.s32.totalorder %s1223_s22, %s1223_s22 }
  0x2f   : > { %p1226_p13 = pnand %p1224_p12, %p1212_p2  ;;  %p1233_p11 = por %p1232_p7, %p1231_p4 }
  0x31   : > { %p1227_p9 = pneg %p1226_p13 }
  0x33   : > { %p1234_p5 = pnand %p1233_p11, %p1227_p9 }
  0x35   : > { %1237 = shalt.err (!%p1234_p5)
}
  0x36   : > { %s1360_s23 = smov 128   ;;  %s1361_s24 = smov 8  }
  0x37   : > { %1133 = dma.hbm_to_vmem [thread:$0]  (!%p1466_p0), %s1815_s2, 8192, %s176_s12, [#allocation9], %s1360_s23, %s1360_s23, %s1361_s24  }
  0x38   : > { %p46_p4 = scmp.ge.s32.totalorder %s44_s14, 2  ;;  %s53_s11 = sadd.s32 1, %s1344_s27 }
  0x39   : > { %p60_p5 = scmp.ne.s32.totalorder %s1344_s27, %s1340_s26  ;;  %p61_p7 = scmp.eq.s32.totalorder %s1356_s30, 0 }
  0x3a   : > { %s1843_s14 = smov (%p46_p4, %s44_s14), 0  ;;  %p1829_p11 = scmp.ne.s32.totalorder %s1823_s7, 0 }
  0x3b   : > { %p1496_p9 = por %p61_p7, %p60_p5  ;;  %s48_s16 = ssub.s32 %s1352_s29, %s1843_s14 }
  0x3c   : > { %p1502_p13 = por %p1829_p11, %p60_p5  ;;  %p1143_p1 = scmp.lt.s32.totalorder %s1356_s30, 2 }
  0x3d   : > { %p51_p0 = scmp.eq.s32.totalorder %s48_s16, 0  ;;  %s189_s12 = sand.u32 1, %s1344_s27  }
  0x3e   : > { %s930_s17 = sshll.u32 %s189_s12, 8  ;;  %s944_s19 = sshll.u32 %s1352_s29, 12 }
  0x3f   : > { %s1511_s18 = scalar_select %p51_p0, %s1344_s27, %s53_s11  }
  0x40   : > { %s1517_s22 = scalar_lea.hbm %s1814_s1, %s944_s19  ;;  %s193_s7 = scalar_lea.vmem [#allocation5], %s930_s17 }
  0x41   : > { %s202_s0 = sshll.u32 %s193_s7, 4  ;;  %p1523_p2 = pnand %p1143_p1, %p1496_p9  ;;  %s1519_s0 = int_to_ptr.vmem [resolvable:$true] %s202_s0 }
  0x42   : > { %s1527_s11 = scalar_lea.sflag [#allocation6], %s189_s12  ;;  %s1238_s16 = scalar_lea.hbm %s1517_s22, 4096 }
  0x43   : > { %p1239_p3 = scmp.ne.s32.totalorder %s1517_s22, %s1238_s16  ;;  %p1240_p6 = pneg %p1523_p2 }
  0x44   : > { %s1243_s15 = scalar_lea.hbm %s1814_s1, 8192  ;;  %p1244_p12 = scmp.lt.u32.totalorder %s1517_s22, %s1814_s1 }
  0x45   : > { %p1241_p8 = pnand %p1240_p6, %p1239_p3  ;;  %p1245_p4 = scmp.lt.u32.totalorder %s1243_s15, %s1238_s16 }
  0x46   : > { %p1247_p7 = scmp.lt.u32.totalorder %s1238_s16, %s1517_s22 }
  0x47   : > { %p1242_p10 = pneg %p1241_p8  ;;  %p1246_p5 = por %p1245_p4, %p1244_p12 }
  0x49   : > { %p1248_p9 = por %p1247_p7, %p1246_p5 }
  0x4b   : > { %p1249_p11 = pnand %p1248_p9, %p1242_p10 }
  0x4d   : > { %1252 = shalt.err (!%p1249_p11)
}
  0x4e   : > { %s1253_s12 = scalar_lea.vmem %s1519_s0, 4096  ;;  %s1362_s7 = smov [#allocation5]  }
  0x4f   : > { %p1254_p1 = scmp.ne.s32.totalorder %s1519_s0, %s1253_s12  ;;  %s1258_s17 = sshll.u32 %s1362_s7, 4  ;;  %s1259_s17 = int_to_ptr.vmem [resolvable:$false] %s1258_s17 }
  0x50   : > { %s1260_s19 = scalar_lea.vmem %s1259_s17, 8192  ;;  %p1261_p8 = scmp.lt.s32.totalorder %s1519_s0, %s1259_s17 }
  0x51   : > { %p1256_p0 = pnand %p1254_p1, %p1240_p6  ;;  %p1262_p12 = scmp.lt.s32.totalorder %s1260_s19, %s1253_s12 }
  0x53   : > { %p1257_p3 = pneg %p1256_p0  ;;  %p1263_p4 = por %p1262_p12, %p1261_p8 }
  0x55   : > { %p1264_p5 = pnand %p1263_p4, %p1257_p3 }
  0x57   : > { %1267 = shalt.err (!%p1264_p5)
}
  0x58   : > { %1137 = dma.hbm_to_vmem [thread:$0]  (!%p1523_p2), %s1517_s22, 4096, %s1519_s0, %s1527_s11, %s1360_s23, %s1360_s23, %s1361_s24  }
  0x59   : > { %p1832_p6 = scmp.ne.s32.totalorder %s1826_s10, 0 }
  0x5a   : > { %s1561_s16 = sand.u32 (!%p1832_p6), 1, %s1340_s26   ;;  %p1833_p10 = scmp.ne.s32.totalorder (!%p1832_p6), %s1824_s8, 0 }
  0x5b   : > { %223 = sbr.rel (%p1832_p6) target bundleno = 411 (0x19b), region = 32  ;;  %s934_s15 = sshll.u32 (!%p1832_p6), %s1561_s16, 8 }
  0x5c   : > { %s226_s20 = scalar_lea.sflag (!%p1832_p6), [#allocation6], %s1561_s16  ;;  %s1567_s5 = scalar_lea.vmem (!%p1832_p6), [#allocation5], %s934_s15 }
  0x62   : > { %1323 = dma.done.wait (%p1833_p10), %s226_s20, 4096  }
  0x63   : > { %1325 = vsyncadd (%p1833_p10), %s226_s20, 4294963200  ;;  %p1834_p2 = scmp.ne.s32.totalorder %s1822_s6, 0 }
  0x65   : > { %1327 = dma.done.wait (%p1834_p2), [#allocation9], 8192  }
  0x66   : > { %1329 = vsyncadd (%p1834_p2), [#allocation9], 4294959104  ;;  %s937_s10 = sshll.u32 %s1348_s28, 2  ;;  %v276_v0 = vld [vmem:[#allocation8] sm:$0xff]  ;;  %v277_v1 = vld [vmem:[#allocation8 + $0x8] sm:$0xff]  ;;  %p263_p7 = scmp.lt.s32.totalorder %s1348_s28, 1 }
  0x67   : > { %s275_s23 = sld [smem:[#allocation4 + %s937_s10]]  ;;  %s309_s24 = sadd.s32 1, %s937_s10  ;;  %v312_v3 = vld [vmem:[#allocation8 + $0x80] sm:$0xff]  ;;  %v313_v6 = vld [vmem:[#allocation8 + $0x88] sm:$0xff]  ;;  %v278_v15 = vld [vmem:[#allocation8 + $0x10] sm:$0xff] }
  0x68   : > { %s310_s22 = sld [smem:[#allocation4 + %s309_s24]]  ;;  %s361_s0 = sadd.s32 2, %s937_s10  ;;  %v364_v8 = vld [vmem:[#allocation8 + $0x100] sm:$0xff]  ;;  %v365_v9 = vld [vmem:[#allocation8 + $0x108] sm:$0xff]  ;;  %v279_v19 = vld [vmem:[#allocation8 + $0x18] sm:$0xff] }
  0x69   : > { %s362_s11 = sld [smem:[#allocation4 + %s361_s0]]  ;;  %s413_s21 = sadd.s32 3, %s937_s10  ;;  %v416_v13 = vld [vmem:[#allocation8 + $0x180] sm:$0xff]  ;;  %v417_v14 = vld [vmem:[#allocation8 + $0x188] sm:$0xff]  ;;  %v314_v21 = vld [vmem:[#allocation8 + $0x90] sm:$0xff] }
  0x6a   : > { %s414_s12 = sld [smem:[#allocation4 + %s413_s21]]  ;;  %v315_v22 = vld [vmem:[#allocation8 + $0x98] sm:$0xff]  ;;  %v366_v27 = vld [vmem:[#allocation8 + $0x110] sm:$0xff]  ;;  %v280_v35 = vld [vmem:[#allocation8 + $0x20] sm:$0xff]  ;;  %s1695_s19 = scalar_lea.vmem [#allocation10], %s934_s15 }
  0x6b   : > { %v367_v28 = vld [vmem:[#allocation8 + $0x118] sm:$0xff]  ;;  %v418_v29 = vld [vmem:[#allocation8 + $0x190] sm:$0xff]  ;;  %v281_v36 = vld [vmem:[#allocation8 + $0x28] sm:$0xff]  ;;  %s264_s6 = scalar_select %p263_p7, %s1348_s28, 1 }
  0x6c   : > { %v419_v34 = vld [vmem:[#allocation8 + $0x198] sm:$0xff]  ;;  %v316_v41 = vld [vmem:[#allocation8 + $0xa0] sm:$0xff]  ;;  %v317_v42 = vld [vmem:[#allocation8 + $0xa8] sm:$0xff]  ;;  %s945_s15 = sshll.u32 %s1348_s28, 12  ;;  %s810_s20 = sshll.u32 %s1695_s19, 4  ;;  %s1758_s20 = int_to_ptr.vmem [resolvable:$true] %s810_s20 }
  0x6d   : > { %v1578_v2 = vstv %s275_s23  ;;  %v368_v43 = vld [vmem:[#allocation8 + $0x120] sm:$0xff]  ;;  %v369_v48 = vld [vmem:[#allocation8 + $0x128] sm:$0xff]  ;;  %v282_v59 = vld [vmem:[#allocation8 + $0x30] sm:$0xff]  ;;  %s268_s17 = scalar_lea.vmem %s1816_s3, %s264_s6  ;;  %s1756_s10 = scalar_lea.hbm %s1817_s4, %s945_s15 }
  0x6e   : > { %v293_v4 = vmul.f32 %v1578_v2, %v276_v0  ;;  %v294_v5 = vmul.f32 %v1578_v2, %v277_v1  ;;  %v1582_v7 = vstv %s310_s22  ;;  %v295_v20 = vmul.f32 %v1578_v2, %v278_v15  ;;  %v420_v49 = vld [vmem:[#allocation8 + $0x1a0] sm:$0xff]  ;;  %v421_v54 = vld [vmem:[#allocation8 + $0x1a8] sm:$0xff]  ;;  %v283_v60 = vld [vmem:[#allocation8 + $0x38] sm:$0xff]  ;;  %s794_s23 = scalar_lea.sflag [#allocation7], %s1561_s16  ;;  %s1268_s24 = scalar_lea.vmem %s1758_s20, 4096 }
  0x6f   : > { %v329_v10 = vmul.f32 %v1582_v7, %v312_v3  ;;  %v330_v11 = vmul.f32 %v1582_v7, %v313_v6  ;;  %v1586_v12 = vstv %s362_s11  ;;  %v296_v30 = vmul.f32 %v1578_v2, %v279_v19  ;;  %v318_v1 = vld [vmem:[#allocation8 + $0xb0] sm:$0xff]  ;;  %p1269_p9 = scmp.ne.s32.totalorder %s1758_s20, %s1268_s24  ;;  %s1363_s22 = smov [#allocation10]  }
  0x70   : > { %v381_v16 = vmul.f32 %v1586_v12, %v364_v8  ;;  %v382_v17 = vmul.f32 %v1586_v12, %v365_v9  ;;  %v1590_v18 = vstv %s414_s12  ;;  %v331_v31 = vmul.f32 %v1582_v7, %v314_v21  ;;  %v319_v8 = vld [vmem:[#allocation8 + $0xb8] sm:$0xff]  ;;  %v370_v9 = vld [vmem:[#allocation8 + $0x130] sm:$0xff]  ;;  %v284_v21 = vld [vmem:[#allocation8 + $0x40] sm:$0xff]  ;;  %s1272_s0 = sshll.u32 %s1363_s22, 4  ;;  %s1273_s0 = int_to_ptr.vmem [resolvable:$false] %s1272_s0 }
  0x71   : > { %v345_v23 = vadd.f32 %v329_v10, %v293_v4  ;;  %v346_v24 = vadd.f32 %v330_v11, %v294_v5  ;;  %v433_v25 = vmul.f32 %v1590_v18, %v416_v13  ;;  %v434_v26 = vmul.f32 %v1590_v18, %v417_v14  ;;  %v371_v10 = vld [vmem:[#allocation8 + $0x138] sm:$0xff]  ;;  %v422_v15 = vld [vmem:[#allocation8 + $0x1b0] sm:$0xff]  ;;  %p1270_p11 = pnand %p1269_p9, %p1502_p13  ;;  %s1274_s11 = scalar_lea.vmem %s1273_s0, 8192 }
  0x72   : > { %v332_v32 = vmul.f32 %v1582_v7, %v315_v22  ;;  %v383_v33 = vmul.f32 %v1586_v12, %v366_v27  ;;  %v384_v39 = vmul.f32 %v1586_v12, %v367_v28  ;;  %v435_v40 = vmul.f32 %v1590_v18, %v418_v29  ;;  %v285_v22 = vld [vmem:[#allocation8 + $0x48] sm:$0xff]  ;;  %v320_v27 = vld [vmem:[#allocation8 + $0xc0] sm:$0xff]  ;;  %p1275_p0 = scmp.lt.s32.totalorder %s1758_s20, %s1273_s0  ;;  %p1276_p3 = scmp.lt.s32.totalorder %s1274_s11, %s1268_s24 }
  0x73   : > { %v397_v37 = vadd.f32 %v381_v16, %v345_v23  ;;  %v398_v38 = vadd.f32 %v382_v17, %v346_v24  ;;  %v347_v44 = vadd.f32 %v331_v31, %v295_v20  ;;  %v436_v46 = vmul.f32 %v1590_v18, %v419_v34  ;;  %v423_v20 = vld [vmem:[#allocation8 + $0x1b8] sm:$0xff]  ;;  %v321_v31 = vld [vmem:[#allocation8 + $0xc8] sm:$0xff]  ;;  %p1271_p1 = pneg %p1270_p11 }
  0x74   : > { %v348_v45 = vadd.f32 %v332_v32, %v296_v30  ;;  %v297_v47 = vmul.f32 %v1578_v2, %v280_v35  ;;  %v298_v52 = vmul.f32 %v1578_v2, %v281_v36  ;;  %v333_v53 = vmul.f32 %v1582_v7, %v316_v41  ;;  %v372_v32 = vld [vmem:[#allocation8 + $0x140] sm:$0xff]  ;;  %p1277_p8 = por %p1276_p3, %p1275_p0 }
  0x75   : > { %v449_v50 = vadd.f32 %v433_v25, %v397_v37  ;;  %v450_v51 = vadd.f32 %v434_v26, %v398_v38  ;;  %v399_v55 = vadd.f32 %v383_v33, %v347_v44  ;;  %v334_v57 = vmul.f32 %v1582_v7, %v317_v42  ;;  %v373_v33 = vld [vmem:[#allocation8 + $0x148] sm:$0xff]  ;;  %v424_v38 = vld [vmem:[#allocation8 + $0x1c0] sm:$0xff] }
  0x76   : > { %v400_v56 = vadd.f32 %v384_v39, %v348_v45  ;;  %v385_v58 = vmul.f32 %v1586_v12, %v368_v43  ;;  %v349_v62 = vadd.f32 %v333_v53, %v297_v47  ;;  %v386_v63 = vmul.f32 %v1586_v12, %v369_v48  ;;  %v425_v42 = vld [vmem:[#allocation8 + $0x1c8] sm:$0xff]  ;;  %v286_v43 = vld [vmem:[#allocation8 + $0x50] sm:$0xff]  ;;  %v287_v48 = vld [vmem:[#allocation8 + $0x58] sm:$0xff]  ;;  %p1278_p12 = pnand %p1277_p8, %p1271_p1 }
  0x77   : > { %v1074_v61 = vpack.c.bf16 %v450_v51, %v449_v50  ;;  %v437_v0 = vmul.f32 %v1590_v18, %v420_v49  ;;  %v451_v3 = vadd.f32 %v435_v40, %v399_v55  ;;  %v350_v5 = vadd.f32 %v334_v57, %v298_v52  ;;  %v322_v49 = vld [vmem:[#allocation8 + $0xd0] sm:$0xff]  ;;  %v323_v53 = vld [vmem:[#allocation8 + $0xd8] sm:$0xff] }
  0x78   : > { %v452_v4 = vadd.f32 %v436_v46, %v400_v56  ;;  %v438_v6 = vmul.f32 %v1590_v18, %v421_v54  ;;  %v401_v11 = vadd.f32 %v385_v58, %v349_v62  ;;  %v299_v13 = vmul.f32 %v1578_v2, %v282_v59  ;;  %v374_v54 = vld [vmem:[#allocation8 + $0x150] sm:$0xff]  ;;  %v375_v59 = vld [vmem:[#allocation8 + $0x158] sm:$0xff] }
  0x79   : > { %1075 = vmatprep.subr.bf16.mxu0 %v1074_v61  ;;  %1106 = vmatprep.subr.bf16.mxu1 %v1074_v61  ;;  %v300_v14 = vmul.f32 %v1578_v2, %v283_v60  ;;  %v402_v17 = vadd.f32 %v386_v63, %v350_v5  ;;  %v335_v19 = vmul.f32 %v1582_v7, %v318_v1  ;;  %v426_v60 = vld [vmem:[#allocation8 + $0x1d0] sm:$0xff]  ;;  %v481_v1 = vld [vmem:[%s1567_s5] sm:$0xff] }
  0x7a   : > { %1077 = vmatpush3.bf16.msra.mxu0 %v1074_v61  ;;  %1114 = vmatpush3.bf16.msra.mxu1 %v1074_v61  ;;  %v1078_v16 = vpack.c.bf16 %v452_v4, %v451_v3  ;;  %v453_v23 = vadd.f32 %v437_v0, %v401_v11  ;;  %v336_v24 = vmul.f32 %v1582_v7, %v319_v8  ;;  %v427_v0 = vld [vmem:[#allocation8 + $0x1d8] sm:$0xff]  ;;  %v497_v3 = vld [vmem:[%s1567_s5 + $0x80] sm:$0xff] }
  0x7b   : > { %v387_v25 = vmul.f32 %v1586_v12, %v370_v9  ;;  %v388_v26 = vmul.f32 %v1586_v12, %v371_v10  ;;  %v454_v28 = vadd.f32 %v438_v6, %v402_v17  ;;  %v351_v29 = vadd.f32 %v335_v19, %v299_v13  ;;  %v288_v9 = vld [vmem:[#allocation8 + $0x60] sm:$0xff]  ;;  %v289_v10 = vld [vmem:[#allocation8 + $0x68] sm:$0xff]  ;;  %1026 = vmatprep.mubr.f32.mxu0 %v481_v1 }
  0x7c   : > { %1079 = vmatprep.subr.bf16.mxu0 %v1078_v16  ;;  %1107 = vmatprep.subr.bf16.mxu1 %v1078_v16  ;;  %v439_v30 = vmul.f32 %v1590_v18, %v422_v15  ;;  %v352_v34 = vadd.f32 %v336_v24, %v300_v14  ;;  %v440_v35 = vmul.f32 %v1590_v18, %v423_v20  ;;  %v325_v17 = vld [vmem:[#allocation8 + $0xe8] sm:$0xff]  ;;  %v428_v24 = vld [vmem:[#allocation8 + $0x1e0] sm:$0xff] }
  0x7d   : > { %v301_v36 = vmul.f32 %v1578_v2, %v284_v21  ;;  %v302_v37 = vmul.f32 %v1578_v2, %v285_v22  ;;  %v1082_v39 = vpack.c.bf16 %v454_v28, %v453_v23  ;;  %v403_v40 = vadd.f32 %v387_v25, %v351_v29  ;;  %1050 = vmatprep.mubr.f32.mxu1 %v497_v3  ;;  %v376_v22 = vld [vmem:[#allocation8 + $0x160] sm:$0xff]  ;;  %v377_v23 = vld [vmem:[#allocation8 + $0x168] sm:$0xff] }
  0x7e   : > { %1081 = vmatpush3.bf16.msra.mxu0 %v1078_v16  ;;  %1115 = vmatpush3.bf16.msra.mxu1 %v1078_v16  ;;  %v337_v41 = vmul.f32 %v1582_v7, %v320_v27  ;;  %v404_v44 = vadd.f32 %v388_v26, %v352_v34  ;;  %v338_v45 = vmul.f32 %v1582_v7, %v321_v31  ;;  %v324_v16 = vld [vmem:[#allocation8 + $0xe0] sm:$0xff]  ;;  %v291_v34 = vld [vmem:[#allocation8 + $0x78] sm:$0xff] }
  0x7f   : > { %v389_v46 = vmul.f32 %v1586_v12, %v372_v32  ;;  %v390_v47 = vmul.f32 %v1586_v12, %v373_v33  ;;  %1083 = vmatprep.subr.bf16.mxu0 %v1082_v39  ;;  %1108 = vmatprep.subr.bf16.mxu1 %v1082_v39  ;;  %v455_v50 = vadd.f32 %v439_v30, %v403_v40  ;;  %v429_v32 = vld [vmem:[#allocation8 + $0x1e8] sm:$0xff]  ;;  %v290_v33 = vld [vmem:[#allocation8 + $0x70] sm:$0xff]  ;;  %v327_v40 = vld [vmem:[#allocation8 + $0xf8] sm:$0xff] }
  0x80   : > { %v353_v51 = vadd.f32 %v337_v41, %v301_v36  ;;  %v441_v52 = vmul.f32 %v1590_v18, %v424_v38  ;;  %v456_v55 = vadd.f32 %v440_v35, %v404_v44  ;;  %v354_v56 = vadd.f32 %v338_v45, %v302_v37  ;;  %v378_v44 = vld [vmem:[#allocation8 + $0x170] sm:$0xff]  ;;  %v379_v45 = vld [vmem:[#allocation8 + $0x178] sm:$0xff] }
  0x81   : > { %v442_v57 = vmul.f32 %v1590_v18, %v425_v42  ;;  %v303_v58 = vmul.f32 %v1578_v2, %v286_v43  ;;  %v304_v62 = vmul.f32 %v1578_v2, %v287_v48  ;;  %v339_v63 = vmul.f32 %v1582_v7, %v322_v49 }
  0x82   : > { %1085 = vmatpush3.bf16.msra.mxu0 %v1082_v39  ;;  %1116 = vmatpush3.bf16.msra.mxu1 %v1082_v39  ;;  %v405_v61 = vadd.f32 %v389_v46, %v353_v51  ;;  %v1086_v4 = vpack.c.bf16 %v456_v55, %v455_v50  ;;  %v406_v5 = vadd.f32 %v390_v47, %v354_v56  ;;  %v326_v39 = vld [vmem:[#allocation8 + $0xf0] sm:$0xff] }
  0x83   : > { %v340_v6 = vmul.f32 %v1582_v7, %v323_v53  ;;  %v391_v8 = vmul.f32 %v1586_v12, %v374_v54  ;;  %v355_v13 = vadd.f32 %v339_v63, %v303_v58  ;;  %v392_v14 = vmul.f32 %v1586_v12, %v375_v59  ;;  %v430_v46 = vld [vmem:[#allocation8 + $0x1f0] sm:$0xff]  ;;  %v431_v54 = vld [vmem:[#allocation8 + $0x1f8] sm:$0xff] }
  0x84   : > { %v457_v11 = vadd.f32 %v441_v52, %v405_v61  ;;  %v443_v15 = vmul.f32 %v1590_v18, %v426_v60  ;;  %1087 = vmatprep.subr.bf16.mxu0 %v1086_v4  ;;  %1109 = vmatprep.subr.bf16.mxu1 %v1086_v4  ;;  %v458_v19 = vadd.f32 %v442_v57, %v406_v5  ;;  %v483_v5 = vld [vmem:[%s1567_s5 + $0x10] sm:$0xff] }
  0x85   : > { %v356_v20 = vadd.f32 %v340_v6, %v304_v62  ;;  %v444_v21 = vmul.f32 %v1590_v18, %v427_v0  ;;  %v407_v25 = vadd.f32 %v391_v8, %v355_v13  ;;  %v305_v26 = vmul.f32 %v1578_v2, %v288_v9  ;;  %v499_v6 = vld [vmem:[%s1567_s5 + $0x90] sm:$0xff]  ;;  %v484_v8 = vld [vmem:[%s1567_s5 + $0x18] sm:$0xff]  ;;  %v486_v13 = vld [vmem:[%s1567_s5 + $0x28] sm:$0xff] }
  0x86   : > { %1089 = vmatpush3.bf16.msra.mxu0 %v1086_v4  ;;  %1117 = vmatpush3.bf16.msra.mxu1 %v1086_v4  ;;  %v306_v27 = vmul.f32 %v1578_v2, %v289_v10  ;;  %v1090_v28 = vpack.c.bf16 %v458_v19, %v457_v11  ;;  %v341_v30 = vmul.f32 %v1582_v7, %v324_v16  ;;  %v498_v4 = vld [vmem:[%s1567_s5 + $0x88] sm:$0xff]  ;;  %v500_v9 = vld [vmem:[%s1567_s5 + $0x98] sm:$0xff]  ;;  %v485_v10 = vld [vmem:[%s1567_s5 + $0x20] sm:$0xff] }
  0x87   : > { %v408_v29 = vadd.f32 %v392_v14, %v356_v20  ;;  %v342_v31 = vmul.f32 %v1582_v7, %v325_v17  ;;  %v459_v35 = vadd.f32 %v443_v15, %v407_v25  ;;  %v393_v36 = vmul.f32 %v1586_v12, %v376_v22  ;;  %v501_v11 = vld [vmem:[%s1567_s5 + $0xa0] sm:$0xff]  ;;  %v502_v14 = vld [vmem:[%s1567_s5 + $0xa8] sm:$0xff]  ;;  %v487_v15 = vld [vmem:[%s1567_s5 + $0x30] sm:$0xff] }
  0x88   : > { %v394_v37 = vmul.f32 %v1586_v12, %v377_v23  ;;  %v445_v38 = vmul.f32 %v1590_v18, %v428_v24  ;;  %1091 = vmatprep.subr.bf16.mxu0 %v1090_v28  ;;  %1110 = vmatprep.subr.bf16.mxu1 %v1090_v28  ;;  %v357_v42 = vadd.f32 %v341_v30, %v305_v26  ;;  %v503_v16 = vld [vmem:[%s1567_s5 + $0xb0] sm:$0xff]  ;;  %v488_v17 = vld [vmem:[%s1567_s5 + $0x38] sm:$0xff]  ;;  %v489_v20 = vld [vmem:[%s1567_s5 + $0x40] sm:$0xff] }
  0x89   : > { %v460_v41 = vadd.f32 %v444_v21, %v408_v29  ;;  %v358_v43 = vadd.f32 %v342_v31, %v306_v27  ;;  %v446_v47 = vmul.f32 %v1590_v18, %v429_v32  ;;  %v307_v48 = vmul.f32 %v1578_v2, %v290_v33  ;;  %v504_v19 = vld [vmem:[%s1567_s5 + $0xb8] sm:$0xff]  ;;  %v505_v21 = vld [vmem:[%s1567_s5 + $0xc0] sm:$0xff]  ;;  %v490_v22 = vld [vmem:[%s1567_s5 + $0x48] sm:$0xff] }
  0x8a   : > { %1093 = vmatpush3.bf16.msra.mxu0 %v1090_v28  ;;  %1118 = vmatpush3.bf16.msra.mxu1 %v1090_v28  ;;  %v308_v49 = vmul.f32 %v1578_v2, %v291_v34  ;;  %v409_v51 = vadd.f32 %v393_v36, %v357_v42  ;;  %v343_v53 = vmul.f32 %v1582_v7, %v326_v39  ;;  %v506_v23 = vld [vmem:[%s1567_s5 + $0xc8] sm:$0xff]  ;;  %v491_v24 = vld [vmem:[%s1567_s5 + $0x50] sm:$0xff]  ;;  %v492_v26 = vld [vmem:[%s1567_s5 + $0x58] sm:$0xff] }
  0x8b   : > { %v1094_v50 = vpack.c.bf16 %v460_v41, %v459_v35  ;;  %v410_v52 = vadd.f32 %v394_v37, %v358_v43  ;;  %v344_v55 = vmul.f32 %v1582_v7, %v327_v40  ;;  %v395_v56 = vmul.f32 %v1586_v12, %v378_v44  ;;  %v507_v25 = vld [vmem:[%s1567_s5 + $0xd0] sm:$0xff]  ;;  %v508_v27 = vld [vmem:[%s1567_s5 + $0xd8] sm:$0xff]  ;;  %v493_v28 = vld [vmem:[%s1567_s5 + $0x60] sm:$0xff] }
  0x8c   : > { %v396_v57 = vmul.f32 %v1586_v12, %v379_v45  ;;  %v447_v58 = vmul.f32 %v1590_v18, %v430_v46  ;;  %v461_v59 = vadd.f32 %v445_v38, %v409_v51  ;;  %v359_v61 = vadd.f32 %v343_v53, %v307_v48  ;;  %v509_v29 = vld [vmem:[%s1567_s5 + $0xe0] sm:$0xff]  ;;  %v494_v30 = vld [vmem:[%s1567_s5 + $0x68] sm:$0xff]  ;;  %v495_v32 = vld [vmem:[%s1567_s5 + $0x70] sm:$0xff] }
  0x8d   : > { %1095 = vmatprep.subr.bf16.mxu0 %v1094_v50  ;;  %1111 = vmatprep.subr.bf16.mxu1 %v1094_v50  ;;  %v462_v60 = vadd.f32 %v446_v47, %v410_v52  ;;  %v360_v2 = vadd.f32 %v344_v55, %v308_v49  ;;  %v448_v62 = vmul.f32 %v1590_v18, %v431_v54  ;;  %v482_v18 = vld [vmem:[%s1567_s5 + $0x8] sm:$0xff]  ;;  %v511_v33 = vld [vmem:[%s1567_s5 + $0xf0] sm:$0xff]  ;;  %v496_v34 = vld [vmem:[%s1567_s5 + $0x78] sm:$0xff] }
  0x8e   : > { %1097 = vmatpush3.bf16.msra.mxu0 %v1094_v50  ;;  %1119 = vmatpush3.bf16.msra.mxu1 %v1094_v50  ;;  %v411_v7 = vadd.f32 %v395_v56, %v359_v61  ;;  %v510_v31 = vld [vmem:[%s1567_s5 + $0xe8] sm:$0xff]  ;;  %v512_v35 = vld [vmem:[%s1567_s5 + $0xf8] sm:$0xff] }
  0x8f   : > { %v1098_v63 = vpack.c.bf16 %v462_v60, %v461_v59  ;;  %v412_v0 = vadd.f32 %v396_v57, %v360_v2  ;;  %v1687_v36 = vld [vmem:[%s268_s17] ss:$0 sm:$0xff] }
  0x90   : > { %v463_v12 = vadd.f32 %v447_v58, %v411_v7 }
  0x91   : > { %1099 = vmatprep.subr.bf16.mxu0 %v1098_v63  ;;  %1112 = vmatprep.subr.bf16.mxu1 %v1098_v63  ;;  %v464_v1 = vadd.f32 %v448_v62, %v412_v0 }
  0x92   : > { %1101 = vmatpush3.bf16.msra.mxu0 %v1098_v63  ;;  %1120 = vmatpush3.bf16.msra.mxu1 %v1098_v63 }
  0x93   : > { %v1102_v3 = vpack.c.bf16 %v464_v1, %v463_v12 }
  0x95   : > { %1103 = vmatprep.subr.bf16.mxu0 %v1102_v3  ;;  %1113 = vmatprep.subr.bf16.mxu1 %v1102_v3 }
  0x96   : > { %1105 = vmatpush3.bf16.msra.mxu0 %v1102_v3  ;;  %1121 = vmatpush3.bf16.msra.mxu1 %v1102_v3 }
  0x99   : > { %1027 = vmatmul.mubr.f32.vlgmr.msra.gmra.mrb[0].mxu0 %v482_v18  ;;  %1051 = vmatmul.mubr.f32.vlgmr.msra.gmra.mrb[0].mxu1 %v498_v4 }
  0x9a   : > { %1029 = vmatprep.mubr.f32.mxu0 %v483_v5  ;;  %1053 = vmatprep.mubr.f32.mxu1 %v499_v6 }
  0x9d   : > { %1030 = vmatmul.mubr.f32.gmra.mrb[2].mxu0 %v484_v8  ;;  %1054 = vmatmul.mubr.f32.gmra.mrb[2].mxu1 %v500_v9 }
  0x9e   : > { %1032 = vmatprep.mubr.f32.mxu0 %v485_v10  ;;  %1056 = vmatprep.mubr.f32.mxu1 %v501_v11 }
  0xa1   : > { %1033 = vmatmul.mubr.f32.gmra.mrb[4].mxu0 %v486_v13  ;;  %1057 = vmatmul.mubr.f32.gmra.mrb[4].mxu1 %v502_v14 }
  0xa2   : > { %1035 = vmatprep.mubr.f32.mxu0 %v487_v15  ;;  %1059 = vmatprep.mubr.f32.mxu1 %v503_v16 }
  0xa5   : > { %1036 = vmatmul.mubr.f32.gmra.mrb[6].mxu0 %v488_v17  ;;  %1060 = vmatmul.mubr.f32.gmra.mrb[6].mxu1 %v504_v19 }
  0xa6   : > { %1038 = vmatprep.mubr.f32.mxu0 %v489_v20  ;;  %1062 = vmatprep.mubr.f32.mxu1 %v505_v21 }
  0xa9   : > { %1039 = vmatmul.mubr.f32.gmra.mrb[8].mxu0 %v490_v22  ;;  %1063 = vmatmul.mubr.f32.gmra.mrb[8].mxu1 %v506_v23 }
  0xaa   : > { %1041 = vmatprep.mubr.f32.mxu0 %v491_v24  ;;  %1065 = vmatprep.mubr.f32.mxu1 %v507_v25 }
  0xad   : > { %1042 = vmatmul.mubr.f32.gmra.mrb[10].mxu0 %v492_v26  ;;  %1066 = vmatmul.mubr.f32.gmra.mrb[10].mxu1 %v508_v27 }
  0xae   : > { %1044 = vmatprep.mubr.f32.mxu0 %v493_v28  ;;  %1068 = vmatprep.mubr.f32.mxu1 %v509_v29 }
  0xb1   : > { %1045 = vmatmul.mubr.f32.gmra.mrb[12].mxu0 %v494_v30  ;;  %1069 = vmatmul.mubr.f32.gmra.mrb[12].mxu1 %v510_v31 }
  0xb2   : > { %1047 = vmatprep.mubr.f32.mxu0 %v495_v32  ;;  %1071 = vmatprep.mubr.f32.mxu1 %v511_v33 }
  0xb5   : > { %1048 = vmatmul.mubr.f32.gmra.mrb[14].mxu0 %v496_v34  ;;  %1072 = vmatmul.mubr.f32.gmra.mrb[14].mxu1 %v512_v35 }
 0x16c   : > { %v1028_v37 = vpop.f32.mrb[0].mxu0  ;;  %v1052_v38 = vpop.f32.mrb[0].mxu1 }
 0x16d   : > { %v608_v39 = vadd.f32 %v1028_v37, %v1687_v36  ;;  %v688_v40 = vadd.f32 %v1052_v38, %v1687_v36  ;;  %v602_v41 = vpop.f32.mrb[1].mxu0  ;;  %v682_v42 = vpop.f32.mrb[1].mxu1 }
 0x16e   : > { %v603_v43 = vadd.f32 %v1687_v36, %v602_v41  ;;  %v683_v44 = vadd.f32 %v1687_v36, %v682_v42 }
 0x16f   : > { %762 = vst [vmem:[%s1695_s19 + $0x8] sm:$0xff] %v608_v39  ;;  %778 = vst [vmem:[%s1695_s19 + $0x88] sm:$0xff] %v688_v40 }
 0x170   : > { %761 = vst [vmem:[%s1695_s19] sm:$0xff] %v603_v43  ;;  %777 = vst [vmem:[%s1695_s19 + $0x80] sm:$0xff] %v683_v44  ;;  %v1031_v45 = vpop.f32.mrb[2].mxu0  ;;  %v1055_v46 = vpop.f32.mrb[2].mxu1 }
 0x171   : > { %v618_v47 = vadd.f32 %v1031_v45, %v1687_v36  ;;  %v698_v48 = vadd.f32 %v1055_v46, %v1687_v36  ;;  %v612_v49 = vpop.f32.mrb[3].mxu0  ;;  %v692_v50 = vpop.f32.mrb[3].mxu1 }
 0x172   : > { %v613_v51 = vadd.f32 %v1687_v36, %v612_v49  ;;  %v693_v52 = vadd.f32 %v1687_v36, %v692_v50 }
 0x173   : > { %764 = vst [vmem:[%s1695_s19 + $0x18] sm:$0xff] %v618_v47  ;;  %780 = vst [vmem:[%s1695_s19 + $0x98] sm:$0xff] %v698_v48 }
 0x174   : > { %763 = vst [vmem:[%s1695_s19 + $0x10] sm:$0xff] %v613_v51  ;;  %779 = vst [vmem:[%s1695_s19 + $0x90] sm:$0xff] %v693_v52  ;;  %v1034_v53 = vpop.f32.mrb[4].mxu0  ;;  %v1058_v54 = vpop.f32.mrb[4].mxu1 }
 0x175   : > { %v628_v55 = vadd.f32 %v1034_v53, %v1687_v36  ;;  %v708_v56 = vadd.f32 %v1058_v54, %v1687_v36  ;;  %v622_v57 = vpop.f32.mrb[5].mxu0  ;;  %v702_v58 = vpop.f32.mrb[5].mxu1 }
 0x176   : > { %v623_v59 = vadd.f32 %v1687_v36, %v622_v57  ;;  %v703_v60 = vadd.f32 %v1687_v36, %v702_v58 }
 0x177   : > { %766 = vst [vmem:[%s1695_s19 + $0x28] sm:$0xff] %v628_v55  ;;  %782 = vst [vmem:[%s1695_s19 + $0xa8] sm:$0xff] %v708_v56 }
 0x178   : > { %765 = vst [vmem:[%s1695_s19 + $0x20] sm:$0xff] %v623_v59  ;;  %781 = vst [vmem:[%s1695_s19 + $0xa0] sm:$0xff] %v703_v60  ;;  %v1037_v61 = vpop.f32.mrb[6].mxu0  ;;  %v1061_v2 = vpop.f32.mrb[6].mxu1 }
 0x179   : > { %v638_v62 = vadd.f32 %v1037_v61, %v1687_v36  ;;  %v718_v63 = vadd.f32 %v1061_v2, %v1687_v36  ;;  %v632_v7 = vpop.f32.mrb[7].mxu0  ;;  %v712_v0 = vpop.f32.mrb[7].mxu1 }
 0x17a   : > { %v633_v12 = vadd.f32 %v1687_v36, %v632_v7  ;;  %v713_v1 = vadd.f32 %v1687_v36, %v712_v0 }
 0x17b   : > { %768 = vst [vmem:[%s1695_s19 + $0x38] sm:$0xff] %v638_v62  ;;  %784 = vst [vmem:[%s1695_s19 + $0xb8] sm:$0xff] %v718_v63 }
 0x17c   : > { %767 = vst [vmem:[%s1695_s19 + $0x30] sm:$0xff] %v633_v12  ;;  %783 = vst [vmem:[%s1695_s19 + $0xb0] sm:$0xff] %v713_v1  ;;  %v1040_v3 = vpop.f32.mrb[8].mxu0  ;;  %v1064_v18 = vpop.f32.mrb[8].mxu1 }
 0x17d   : > { %v648_v4 = vadd.f32 %v1040_v3, %v1687_v36  ;;  %v728_v5 = vadd.f32 %v1064_v18, %v1687_v36  ;;  %v642_v6 = vpop.f32.mrb[9].mxu0  ;;  %v722_v8 = vpop.f32.mrb[9].mxu1 }
 0x17e   : > { %v643_v9 = vadd.f32 %v1687_v36, %v642_v6  ;;  %v723_v10 = vadd.f32 %v1687_v36, %v722_v8 }
 0x17f   : > { %770 = vst [vmem:[%s1695_s19 + $0x48] sm:$0xff] %v648_v4  ;;  %786 = vst [vmem:[%s1695_s19 + $0xc8] sm:$0xff] %v728_v5 }
 0x180   : > { %769 = vst [vmem:[%s1695_s19 + $0x40] sm:$0xff] %v643_v9  ;;  %785 = vst [vmem:[%s1695_s19 + $0xc0] sm:$0xff] %v723_v10  ;;  %v1043_v11 = vpop.f32.mrb[10].mxu0  ;;  %v1067_v13 = vpop.f32.mrb[10].mxu1 }
 0x181   : > { %v658_v14 = vadd.f32 %v1043_v11, %v1687_v36  ;;  %v738_v15 = vadd.f32 %v1067_v13, %v1687_v36  ;;  %v652_v16 = vpop.f32.mrb[11].mxu0  ;;  %v732_v17 = vpop.f32.mrb[11].mxu1 }
 0x182   : > { %v653_v19 = vadd.f32 %v1687_v36, %v652_v16  ;;  %v733_v20 = vadd.f32 %v1687_v36, %v732_v17 }
 0x183   : > { %772 = vst [vmem:[%s1695_s19 + $0x58] sm:$0xff] %v658_v14  ;;  %788 = vst [vmem:[%s1695_s19 + $0xd8] sm:$0xff] %v738_v15 }
 0x184   : > { %771 = vst [vmem:[%s1695_s19 + $0x50] sm:$0xff] %v653_v19  ;;  %787 = vst [vmem:[%s1695_s19 + $0xd0] sm:$0xff] %v733_v20  ;;  %v1046_v21 = vpop.f32.mrb[12].mxu0  ;;  %v1070_v22 = vpop.f32.mrb[12].mxu1 }
 0x185   : > { %v668_v23 = vadd.f32 %v1046_v21, %v1687_v36  ;;  %v748_v24 = vadd.f32 %v1070_v22, %v1687_v36  ;;  %v662_v25 = vpop.f32.mrb[13].mxu0  ;;  %v742_v26 = vpop.f32.mrb[13].mxu1 }
 0x186   : > { %v663_v27 = vadd.f32 %v1687_v36, %v662_v25  ;;  %v743_v28 = vadd.f32 %v1687_v36, %v742_v26 }
 0x187   : > { %774 = vst [vmem:[%s1695_s19 + $0x68] sm:$0xff] %v668_v23  ;;  %790 = vst [vmem:[%s1695_s19 + $0xe8] sm:$0xff] %v748_v24 }
 0x188   : > { %773 = vst [vmem:[%s1695_s19 + $0x60] sm:$0xff] %v663_v27  ;;  %789 = vst [vmem:[%s1695_s19 + $0xe0] sm:$0xff] %v743_v28  ;;  %v1049_v29 = vpop.f32.mrb[14].mxu0  ;;  %v1073_v30 = vpop.f32.mrb[14].mxu1 }
 0x189   : > { %v678_v31 = vadd.f32 %v1049_v29, %v1687_v36  ;;  %v758_v32 = vadd.f32 %v1073_v30, %v1687_v36  ;;  %v672_v33 = vpop.f32.mrb[15].mxu0  ;;  %v752_v34 = vpop.f32.mrb[15].mxu1 }
 0x18a   : > { %v673_v35 = vadd.f32 %v1687_v36, %v672_v33  ;;  %v753_v37 = vadd.f32 %v1687_v36, %v752_v34 }
 0x18b   : > { %776 = vst [vmem:[%s1695_s19 + $0x78] sm:$0xff] %v678_v31  ;;  %792 = vst [vmem:[%s1695_s19 + $0xf8] sm:$0xff] %v758_v32 }
 0x18c   : > { %775 = vst [vmem:[%s1695_s19 + $0x70] sm:$0xff] %v673_v35  ;;  %791 = vst [vmem:[%s1695_s19 + $0xf0] sm:$0xff] %v753_v37 }
 0x18d   : > { %1281 = shalt.err (!%p1278_p12)
}
 0x18e   : > { %s1282_s21 = scalar_lea.hbm %s1756_s10, 4096  ;;  %s1286_s8 = scalar_lea.hbm %s1817_s4, 8192 }
 0x18f   : > { %p1283_p4 = scmp.ne.s32.totalorder %s1756_s10, %s1282_s21  ;;  %p1287_p10 = scmp.lt.u32.totalorder %s1756_s10, %s1817_s4 }
 0x190   : > { %p1288_p2 = scmp.lt.u32.totalorder %s1286_s8, %s1282_s21  ;;  %p1290_p9 = scmp.lt.u32.totalorder %s1282_s21, %s1756_s10 }
 0x191   : > { %p1284_p5 = pnand %p1283_p4, %p1502_p13 }
 0x192   : > { %p1289_p7 = por %p1288_p2, %p1287_p10 }
 0x193   : > { %p1285_p6 = pneg %p1284_p5 }
 0x194   : > { %p1291_p11 = por %p1290_p9, %p1289_p7 }
 0x196   : > { %p1292_p1 = pnand %p1291_p11, %p1285_p6 }
 0x198   : > { %1295 = shalt.err (!%p1292_p1)
}
 0x199   : > { %s1364_s19 = smov 128   ;;  %s1365_s15 = smov 8  }
 0x19a   : > { %1128 = dma.vmem_to_hbm [thread:$0]  (%p1502_p13), %s1758_s20, 4096, %s1756_s10, %s794_s23, %s1364_s19, %s1364_s19, %s1365_s15  }
 0x19b PF: > { %s825_s28 = sand.u32 1, %s1336_s25   ;;  %p1835_p0 = scmp.ne.s32.totalorder %s1825_s9, 0 }
 0x19c   : > { %p1836_p3 = scmp.ge.s32.totalorder %s1356_s30, 2  ;;  %s826_s5 = scalar_lea.sflag [#allocation7], %s825_s28 }
 0x19e   : > { %p1139_p8 = pnand %p1836_p3, %p1835_p0 }
 0x1a0   : > { %1331 = dma.done.wait (!%p1139_p8), %s826_s5, 4096  }
 0x1a1   : > { %1333 = vsyncadd (!%p1139_p8), %s826_s5, 4294963200  ;;  %s25_s30 = sadd.s32 1, %s1356_s30   ;;  %s1837_s25 = smov %s1340_s26 }
 0x1a2   : > { %p22_p12 = scmp.ge.s32.totalorder %s25_s30, 4   ;;  %s1838_s26 = smov %s1344_s27 }
 0x1a3   : > { %s1839_s27 = smov %s1511_s18  ;;  %s1840_s28 = smov %s1352_s29 }
 0x1a4   : > { %s1841_s29 = smov %s1843_s14  ;;  %24 = sbr.rel (!%p22_p12) target bundleno = 19 (0x13), region = 92 }
 0x1ab   :  { %831 = vsyncpa [#allocation6], 1 }
 0x1ac   :  { %833 = vsyncpa [#allocation6 + $0x1], 1 }
 0x1ad   :  { %834 = vsyncpa [#allocation9], 1 }
 0x1ae   :  { %835 = vsyncpa [#allocation7], 1 }
 0x1af   :  { %837 = vsyncpa [#allocation7 + $0x1], 1 }

</bundles_post_ra>
